<compile_context>
chip_gen: v7x
topology: tpu7x:2x2x1
jax: 0.10.0
libtpu: 0.0.40
codegen_flags: <defaults>
</compile_context>

<pallas_src>
import numpy as np

import jax
import jax.numpy as jnp
from jax.experimental import pallas as pl
from jax.experimental.pallas import tpu as pltpu

LR_SLOPE = 0.2
MXU_DTYPE = jnp.bfloat16  # MXU operand dtype; accumulation stays f32


# ----------------------------------------------------------------------------
# In-kernel helpers
# ----------------------------------------------------------------------------
def _lrelu(x):
    # PyTorch LeakyReLU(0.2): x if x >= 0 else 0.2 * x (equal at 0).
    return jnp.where(x > 0, x, LR_SLOPE * x)


def _dot(w_bf16, x_f32):
    # Weights are pre-cast to bf16 once in the wrapper; only the activation is
    # cast at the MXU boundary.  f32 accumulation.
    return jnp.dot(w_bf16, x_f32.astype(MXU_DTYPE),
                   preferred_element_type=jnp.float32)


def _conv3(x, w_ref, b_ref, left_mask, right_mask):
    """Conv1d(kernel=3, padding=1) on a channels-first (Cin, BB*T) slab.

    w_ref:  (3, Cout, Cin) bf16 per-tap matrices (k = 0, 1, 2)
    b_ref:  (Cout, 1) f32 bias column
    masks:  (1, BB*T) f32, zero at columns whose shifted neighbour would cross a
            per-sample boundary (implements per-sample zero padding with the
            batch folded onto the lane axis).
    """
    cin, n = x.shape
    z = jnp.zeros((cin, 1), jnp.float32)
    # Column p holds x[:, p-1] / x[:, p+1]; boundary columns zeroed by the mask.
    x_m1 = jnp.concatenate([z, x[:, :n - 1]], axis=1) * left_mask
    x_p1 = jnp.concatenate([x[:, 1:], z], axis=1) * right_mask
    # TODO(synk): pltpu.roll(x, +/-1, axis=1) would move these shifts onto the
    # otherwise-idle XLU slot; kept as slice+concat for lowering robustness at
    # non-128-multiple lane extents.
    return (_dot(w_ref[0], x_m1) + _dot(w_ref[1], x) + _dot(w_ref[2], x_p1)
            + b_ref[...])


# Order of weight arguments passed to the fused kernel.
W_ORDER = (
    "kmr_w0", "kmr_b0", "kmr_w1", "kmr_b1", "kmr_w2", "kmr_b2",
    "ref_w0", "ref_b0", "ref_w1", "ref_b1", "ref_w2", "ref_b2",
    "refout_w0m", "refout_w0s", "refout_b0", "refout_w1", "refout_b1",
    "out_w0a", "out_w0b", "out_b0", "out_w1", "out_b1",
)


def _fused_kernel(emb_ref, mel_ref, maskk_ref, maskm_ref, sel_ref, exp_ref,
                  kw0, kb0, kw1, kb1, kw2, kb2,
                  rw0, rb0, rw1, rb1, rw2, rb2,
                  r0m, r0s, r0b, r1w, r1b,
                  owa, owb, ob0, ow1, ob1,
                  c_ref, ro_ref):
    maskk = maskk_ref[...]
    maskm = maskm_ref[...]
    lk, rk = maskk[0:1, :], maskk[1:2, :]
    lm, rm = maskm[0:1, :], maskm[1:2, :]

    # ------------------------------------------------------------------
    # Reference branch: mel (n_mels, BB*Tm) -> ro (ref_ch, BB)
    # ------------------------------------------------------------------
    x = mel_ref[0]                                            # f32, channels-first
    x = _lrelu(_conv3(x, rw0, rb0, lm, rm))
    x = _lrelu(_conv3(x, rw1, rb1, lm, rm))
    x = _lrelu(_conv3(x, rw2, rb2, lm, rm))                   # (ref_ch, BB*Tm)

    sel = sel_ref[...]                                        # (BB*Tm, BB) f32 one-hot
    bb = sel.shape[1]
    tm = x.shape[1] // bb
    # Per-sample mean / unbiased std via a selection matmul, kept entirely in f32.
    sums = jnp.dot(x, sel, preferred_element_type=jnp.float32)        # (ref_ch, BB)
    sumsq = jnp.dot(x * x, sel, preferred_element_type=jnp.float32)
    mean = sums * (1.0 / tm)
    var = jnp.maximum(sumsq - mean * sums, 0.0) * (1.0 / (tm - 1))    # torch.std (ddof=1)
    std = jnp.sqrt(var)

    # ref_out: concat([mean, std]) @ W0  ==  W0m @ mean + W0s @ std.
    r = _lrelu(_dot(r0m[...], mean) + _dot(r0s[...], std) + r0b[...])
    ro = _dot(r1w[...], r) + r1b[...]                         # (ref_ch, BB)
    ro_ref[0] = ro.astype(ro_ref.dtype)

    # ------------------------------------------------------------------
    # km branch: embedding (emb, BB*Tk) -> c (ure, BB*Tk)
    # ------------------------------------------------------------------
    e = emb_ref[0]                                            # already channels-first
    h = _lrelu(_conv3(e, kw0, kb0, lk, rk))
    h = _lrelu(_conv3(h, kw1, kb1, lk, rk))
    h = _lrelu(_conv3(h, kw2, kb2, lk, rk))
    km_feat = e + h                                           # residual, in VMEM

    # out[0] on concat([km_feat, ref.expand]) == Wa @ km_feat + (Wb @ ro) @ expand.
    ref_bc = jnp.dot(_dot(owb[...], ro), exp_ref[...],
                     preferred_element_type=jnp.float32)      # (ure, BB*Tk)
    c1 = _lrelu(_dot(owa[...], km_feat) + ref_bc + ob0[...])
    c = _dot(ow1[...], c1) + ob1[...]                         # (ure, BB*Tk)
    c_ref[0] = c.astype(c_ref.dtype)


# ----------------------------------------------------------------------------
# Wrapper-side layout plumbing
# ----------------------------------------------------------------------------
def _pick_batch_block(batch, tk, tm, target_lanes=256, max_cols=8192):
    """Largest divisor of `batch` (within a VMEM-friendly column cap) so that the
    folded batch*time lane extent approaches the MXU/lane target width.
    At production sizes prefer leaving the grid length >= 2 for megacore."""
    bb = 1
    for d in range(1, batch + 1):
        if batch % d:
            continue
        if d * max(tk, tm) > max_cols:
            break
        bb = d
        if d * tk >= target_lanes:
            break
    return bb


def _edge_masks(bb, t):
    m = np.ones((2, bb * t), np.float32)
    m[0, 0::t] = 0.0        # t == 0     (no left neighbour within the sample)
    m[1, t - 1::t] = 0.0    # t == T-1   (no right neighbour within the sample)
    return jnp.asarray(m)


def _mean_selector(bb, t):
    s = np.zeros((bb * t, bb), np.float32)
    for b in range(bb):
        s[b * t:(b + 1) * t, b] = 1.0
    return jnp.asarray(s)


def _expander(bb, t):
    e = np.zeros((bb, bb * t), np.float32)
    for b in range(bb):
        e[b, b * t:(b + 1) * t] = 1.0
    return jnp.asarray(e)


def unit_ref_encoder_forward(packed, km, mel):
    """km: int32 (B, Tk); mel: float32 (B, num_mels, Tm) [PyTorch NCW layout].

    Returns (c, ref) in PyTorch layouts: c (B, ure, Tk), ref (B, ref, 1).
    """
    B, Tk = km.shape
    _, n_mels, Tm = mel.shape
    assert Tm >= 2, "torch.std over a single frame divides by (T-1)=0"
    emb_ch = packed["embedding"].shape[1]
    ref_ch = packed["refout_w1"].shape[0]
    ure_ch = packed["out_w1"].shape[0]

    BB = _pick_batch_block(B, Tk, Tm)
    G = B // BB
    Nk, Nm = BB * Tk, BB * Tm

    # TODO(synk): embedding gather stays in plain JAX (scalar-indexed gather has
    # no clean single-tile Pallas form at this size); Dropout(0.5) is identity.
    emb = jnp.take(packed["embedding"], km, axis=0)                   # (B, Tk, emb)
    # Channels-first + batch folded onto the lane axis (wrapper-side plumbing).
    emb_blk = (jnp.transpose(emb, (0, 2, 1))
               .reshape(G, BB, emb_ch, Tk).transpose(0, 2, 1, 3)
               .reshape(G, emb_ch, Nk))
    mel_blk = (mel.reshape(G, BB, n_mels, Tm).transpose(0, 2, 1, 3)
               .reshape(G, n_mels, Nm))

    aux = [_edge_masks(BB, Tk), _edge_masks(BB, Tm),
           _mean_selector(BB, Tm), _expander(BB, Tk)]
    weights = [packed[k] for k in W_ORDER]

    def const_spec(a):
        nd = a.ndim
        return pl.BlockSpec(a.shape, lambda g, _n=nd: (0,) * _n)

    c_blk, ro_blk = pl.pallas_call(
        _fused_kernel,
        out_shape=(
            jax.ShapeDtypeStruct((G, ure_ch, Nk), jnp.float32),
            jax.ShapeDtypeStruct((G, ref_ch, BB), jnp.float32),
        ),
        grid=(G,),
        in_specs=[
            pl.BlockSpec((1, emb_ch, Nk), lambda g: (g, 0, 0)),
            pl.BlockSpec((1, n_mels, Nm), lambda g: (g, 0, 0)),
        ] + [const_spec(a) for a in aux] + [const_spec(w) for w in weights],
        out_specs=[
            pl.BlockSpec((1, ure_ch, Nk), lambda g: (g, 0, 0)),
            pl.BlockSpec((1, ref_ch, BB), lambda g: (g, 0, 0)),
        ],
        compiler_params=pltpu.CompilerParams(
            dimension_semantics=("parallel",),
            vmem_limit_bytes=32 * 1024 * 1024),
    )(emb_blk, mel_blk, *aux, *weights)

    # Unfold batch blocks back to PyTorch layouts.
    c = (c_blk.reshape(G, ure_ch, BB, Tk).transpose(0, 2, 1, 3)
         .reshape(B, ure_ch, Tk))
    ref = ro_blk.transpose(0, 2, 1).reshape(B, ref_ch)[:, :, None]
    return c, ref


# ----------------------------------------------------------------------------
# Parameters: torch-layout init + one-time packing into kernel-friendly layout.
# ----------------------------------------------------------------------------
def init_params(key, h):
    def nrm(k, shape, scale=0.1):
        return scale * jax.random.normal(k, shape, dtype=jnp.float32)

    ks = iter(jax.random.split(key, 40))
    emb, ref, mel, ure = (h["emb_channels"], h["ref_channels"],
                          h["num_mels"], h["ure_channels"])

    embedding = nrm(next(ks), (h["num_km"] + 1, emb))
    embedding = embedding.at[h["num_km"]].set(0.0)            # padding_idx row

    def conv3(cin, cout):
        return nrm(next(ks), (cout, cin, 3)), nrm(next(ks), (cout,))

    p = {"embedding": embedding}
    p["kmr_w0"], p["kmr_b0"] = conv3(emb, emb)
    p["kmr_w1"], p["kmr_b1"] = conv3(emb, emb)
    p["kmr_w2"], p["kmr_b2"] = conv3(emb, emb)
    p["ref_w0"], p["ref_b0"] = conv3(mel, ref)
    p["ref_w1"], p["ref_b1"] = conv3(ref, ref)
    p["ref_w2"], p["ref_b2"] = conv3(ref, ref)
    p["refout_w0"] = nrm(next(ks), (ref, 2 * ref))
    p["refout_b0"] = nrm(next(ks), (ref,))
    p["refout_w1"] = nrm(next(ks), (ref, ref))
    p["refout_b1"] = nrm(next(ks), (ref,))
    p["out_w0"] = nrm(next(ks), (ure, emb + ref))
    p["out_b0"] = nrm(next(ks), (ure,))
    p["out_w1"] = nrm(next(ks), (ure, ure))
    p["out_b1"] = nrm(next(ks), (ure,))
    return p


def pack_params(p):
    """One-time conversion into kernel layout: per-tap bf16 conv weight stacks,
    split halves for the concat-1x1s, f32 bias columns."""
    def conv_taps(w):                       # (Cout, Cin, 3) -> (3, Cout, Cin) bf16
        return jnp.transpose(w, (2, 0, 1)).astype(MXU_DTYPE)

    def col(b):                             # (C,) -> (C, 1) f32
        return b.reshape(-1, 1).astype(jnp.float32)

    emb_ch = p["embedding"].shape[1]
    ref_ch = p["refout_w1"].shape[0]

    q = {"embedding": p["embedding"]}
    for i in range(3):
        q[f"kmr_w{i}"] = conv_taps(p[f"kmr_w{i}"]); q[f"kmr_b{i}"] = col(p[f"kmr_b{i}"])
        q[f"ref_w{i}"] = conv_taps(p[f"ref_w{i}"]); q[f"ref_b{i}"] = col(p[f"ref_b{i}"])
    q["refout_w0m"] = p["refout_w0"][:, :ref_ch].astype(MXU_DTYPE)
    q["refout_w0s"] = p["refout_w0"][:, ref_ch:].astype(MXU_DTYPE)
    q["refout_b0"] = col(p["refout_b0"])
    q["refout_w1"] = p["refout_w1"].astype(MXU_DTYPE)
    q["refout_b1"] = col(p["refout_b1"])
    q["out_w0a"] = p["out_w0"][:, :emb_ch].astype(MXU_DTYPE)
    q["out_w0b"] = p["out_w0"][:, emb_ch:].astype(MXU_DTYPE)
    q["out_b0"] = col(p["out_b0"])
    q["out_w1"] = p["out_w1"].astype(MXU_DTYPE)
    q["out_b1"] = col(p["out_b1"])
    return q


# ----------------------------------------------------------------------------
# Pure-JAX f32 reference (mirrors the PyTorch module in eval mode).
# ----------------------------------------------------------------------------
def reference_forward(p, km, mel):
    def lrelu(v):
        return jnp.where(v > 0, v, LR_SLOPE * v)

    def conv3(x, w, b):                     # x (B, Cin, T), w (Cout, Cin, 3)
        T = x.shape[-1]
        xp = jnp.pad(x, ((0, 0), (0, 0), (1, 1)))
        y = (jnp.einsum('oi,bit->bot', w[:, :, 0], xp[:, :, 0:T])
             + jnp.einsum('oi,bit->bot', w[:, :, 1], xp[:, :, 1:T + 1])
             + jnp.einsum('oi,bit->bot', w[:, :, 2], xp[:, :, 2:T + 2]))
        return y + b[None, :, None]

    B, Tk = km.shape
    e = jnp.take(p["embedding"], km, axis=0).transpose(0, 2, 1)
    h = e
    for i in range(3):
        h = lrelu(conv3(h, p[f"kmr_w{i}"], p[f"kmr_b{i}"]))
    kmf = e + h

    x = mel
    for i in range(3):
        x = lrelu(conv3(x, p[f"ref_w{i}"], p[f"ref_b{i}"]))
    mean = x.mean(axis=2)
    std = jnp.sqrt(jnp.sum((x - mean[:, :, None]) ** 2, axis=2) / (x.shape[2] - 1))
    r = jnp.concatenate([mean, std], axis=1)[:, :, None]
    r = lrelu(jnp.einsum('oi,bil->bol', p["refout_w0"], r) + p["refout_b0"][None, :, None])
    r = jnp.einsum('oi,bil->bol', p["refout_w1"], r) + p["refout_b1"][None, :, None]

    ref_ch = r.shape[1]
    cat = jnp.concatenate([kmf, jnp.broadcast_to(r, (B, ref_ch, Tk))], axis=1)
    c = lrelu(jnp.einsum('oi,bit->bot', p["out_w0"], cat) + p["out_b0"][None, :, None])
    c = jnp.einsum('oi,bit->bot', p["out_w1"], c) + p["out_b1"][None, :, None]
    return c, r


if __name__ == "__main__":
    # Small hyperparameters consistent with the module's __init__.
    h = dict(num_km=10, emb_channels=32, num_mels=16, ref_channels=32, ure_channels=32)
    B, T_km, T_mel = 2, 8, 16

    key = jax.random.PRNGKey(0)
    k_p, k_km, k_mel = jax.random.split(key, 3)

    params = init_params(k_p, h)
    packed = pack_params(params)            # one-time bf16 weight packing
    km = jax.random.randint(k_km, (B, T_km), 0, h["num_km"] + 1, dtype=jnp.int32)
    mel = jax.random.normal(k_mel, (B, h["num_mels"], T_mel), dtype=jnp.float32)

    fwd = jax.jit(unit_ref_encoder_forward)
    c, ref = fwd(packed, km, mel)
    jax.block_until_ready((c, ref))

    assert c.shape == (B, h["ure_channels"], T_km), c.shape
    assert ref.shape == (B, h["ref_channels"], 1), ref.shape
    assert bool(jnp.all(jnp.isfinite(c))) and bool(jnp.all(jnp.isfinite(ref)))

    # Pure-JAX f32 reference check (bf16 MXU operands -> loose tolerance).
    c_ref, ref_ref = reference_forward(params, km, mel)
    assert jnp.allclose(c, c_ref, rtol=5e-2, atol=5e-2), \
        float(jnp.max(jnp.abs(c - c_ref)))
    assert jnp.allclose(ref, ref_ref, rtol=5e-2, atol=5e-2), \
        float(jnp.max(jnp.abs(ref - ref_ref)))

    print("KERNEL_OK")
</pallas_src>

<mosaic_0001>
module attributes {stable_mosaic.version = 11 : i64} {
  func.func @_fused_kernel(%arg0: i32, %arg1: memref<1x32x16xf32, #tpu.memory_space<vmem>>, %arg2: memref<1x16x32xf32, #tpu.memory_space<vmem>>, %arg3: memref<2x16xf32, #tpu.memory_space<vmem>>, %arg4: memref<2x32xf32, #tpu.memory_space<vmem>>, %arg5: memref<32x2xf32, #tpu.memory_space<vmem>>, %arg6: memref<2x16xf32, #tpu.memory_space<vmem>>, %arg7: memref<3x32x32xbf16, #tpu.memory_space<vmem>>, %arg8: memref<32x1xf32, #tpu.memory_space<vmem>>, %arg9: memref<3x32x32xbf16, #tpu.memory_space<vmem>>, %arg10: memref<32x1xf32, #tpu.memory_space<vmem>>, %arg11: memref<3x32x32xbf16, #tpu.memory_space<vmem>>, %arg12: memref<32x1xf32, #tpu.memory_space<vmem>>, %arg13: memref<3x32x16xbf16, #tpu.memory_space<vmem>>, %arg14: memref<32x1xf32, #tpu.memory_space<vmem>>, %arg15: memref<3x32x32xbf16, #tpu.memory_space<vmem>>, %arg16: memref<32x1xf32, #tpu.memory_space<vmem>>, %arg17: memref<3x32x32xbf16, #tpu.memory_space<vmem>>, %arg18: memref<32x1xf32, #tpu.memory_space<vmem>>, %arg19: memref<32x32xbf16, #tpu.memory_space<vmem>>, %arg20: memref<32x32xbf16, #tpu.memory_space<vmem>>, %arg21: memref<32x1xf32, #tpu.memory_space<vmem>>, %arg22: memref<32x32xbf16, #tpu.memory_space<vmem>>, %arg23: memref<32x1xf32, #tpu.memory_space<vmem>>, %arg24: memref<32x32xbf16, #tpu.memory_space<vmem>>, %arg25: memref<32x32xbf16, #tpu.memory_space<vmem>>, %arg26: memref<32x1xf32, #tpu.memory_space<vmem>>, %arg27: memref<32x32xbf16, #tpu.memory_space<vmem>>, %arg28: memref<32x1xf32, #tpu.memory_space<vmem>>, %arg29: memref<1x32x16xf32, #tpu.memory_space<vmem>>, %arg30: memref<1x32x2xf32, #tpu.memory_space<vmem>>) attributes {dimension_semantics = [#tpu.dimension_semantics<parallel>], iteration_bounds = array<i64: 1>, scalar_prefetch = 0 : i64, scratch_operands = 0 : i64, tpu.core_type = #tpu.core_type<tc>, window_params = [{transform_indices = @transform_0, window_bounds = array<i64: 1, 32, 16>}, {transform_indices = @transform_1, window_bounds = array<i64: 1, 16, 32>}, {pipeline_mode = #tpu.pipeline_mode<synchronous>, transform_indices = @transform_2, window_bounds = array<i64: 2, 16>}, {pipeline_mode = #tpu.pipeline_mode<synchronous>, transform_indices = @transform_3, window_bounds = array<i64: 2, 32>}, {pipeline_mode = #tpu.pipeline_mode<synchronous>, transform_indices = @transform_4, window_bounds = array<i64: 32, 2>}, {pipeline_mode = #tpu.pipeline_mode<synchronous>, transform_indices = @transform_5, window_bounds = array<i64: 2, 16>}, {pipeline_mode = #tpu.pipeline_mode<synchronous>, transform_indices = @transform_6, window_bounds = array<i64: 3, 32, 32>}, {pipeline_mode = #tpu.pipeline_mode<synchronous>, transform_indices = @transform_7, window_bounds = array<i64: 32, 1>}, {pipeline_mode = #tpu.pipeline_mode<synchronous>, transform_indices = @transform_8, window_bounds = array<i64: 3, 32, 32>}, {pipeline_mode = #tpu.pipeline_mode<synchronous>, transform_indices = @transform_9, window_bounds = array<i64: 32, 1>}, {pipeline_mode = #tpu.pipeline_mode<synchronous>, transform_indices = @transform_10, window_bounds = array<i64: 3, 32, 32>}, {pipeline_mode = #tpu.pipeline_mode<synchronous>, transform_indices = @transform_11, window_bounds = array<i64: 32, 1>}, {pipeline_mode = #tpu.pipeline_mode<synchronous>, transform_indices = @transform_12, window_bounds = array<i64: 3, 32, 16>}, {pipeline_mode = #tpu.pipeline_mode<synchronous>, transform_indices = @transform_13, window_bounds = array<i64: 32, 1>}, {pipeline_mode = #tpu.pipeline_mode<synchronous>, transform_indices = @transform_14, window_bounds = array<i64: 3, 32, 32>}, {pipeline_mode = #tpu.pipeline_mode<synchronous>, transform_indices = @transform_15, window_bounds = array<i64: 32, 1>}, {pipeline_mode = #tpu.pipeline_mode<synchronous>, transform_indices = @transform_16, window_bounds = array<i64: 3, 32, 32>}, {pipeline_mode = #tpu.pipeline_mode<synchronous>, transform_indices = @transform_17, window_bounds = array<i64: 32, 1>}, {pipeline_mode = #tpu.pipeline_mode<synchronous>, transform_indices = @transform_18, window_bounds = array<i64: 32, 32>}, {pipeline_mode = #tpu.pipeline_mode<synchronous>, transform_indices = @transform_19, window_bounds = array<i64: 32, 32>}, {pipeline_mode = #tpu.pipeline_mode<synchronous>, transform_indices = @transform_20, window_bounds = array<i64: 32, 1>}, {pipeline_mode = #tpu.pipeline_mode<synchronous>, transform_indices = @transform_21, window_bounds = array<i64: 32, 32>}, {pipeline_mode = #tpu.pipeline_mode<synchronous>, transform_indices = @transform_22, window_bounds = array<i64: 32, 1>}, {pipeline_mode = #tpu.pipeline_mode<synchronous>, transform_indices = @transform_23, window_bounds = array<i64: 32, 32>}, {pipeline_mode = #tpu.pipeline_mode<synchronous>, transform_indices = @transform_24, window_bounds = array<i64: 32, 32>}, {pipeline_mode = #tpu.pipeline_mode<synchronous>, transform_indices = @transform_25, window_bounds = array<i64: 32, 1>}, {pipeline_mode = #tpu.pipeline_mode<synchronous>, transform_indices = @transform_26, window_bounds = array<i64: 32, 32>}, {pipeline_mode = #tpu.pipeline_mode<synchronous>, transform_indices = @transform_27, window_bounds = array<i64: 32, 1>}, {transform_indices = @transform_28, window_bounds = array<i64: 1, 32, 16>}, {transform_indices = @transform_29, window_bounds = array<i64: 1, 32, 2>}]} {
    %c0 = arith.constant 0 : index
    %c0_0 = arith.constant 0 : index
    %0 = vector.load %arg3[%c0, %c0_0] : memref<2x16xf32, #tpu.memory_space<vmem>>, vector<2x16xf32>
    %c0_1 = arith.constant 0 : index
    %c0_2 = arith.constant 0 : index
    %1 = vector.load %arg4[%c0_1, %c0_2] : memref<2x32xf32, #tpu.memory_space<vmem>>, vector<2x32xf32>
    %2 = vector.extract_strided_slice %0 {offsets = [0, 0], sizes = [1, 16], strides = [1, 1]} : vector<2x16xf32> to vector<1x16xf32>
    %3 = vector.extract_strided_slice %0 {offsets = [1, 0], sizes = [1, 16], strides = [1, 1]} : vector<2x16xf32> to vector<1x16xf32>
    %4 = vector.extract_strided_slice %1 {offsets = [0, 0], sizes = [1, 32], strides = [1, 1]} : vector<2x32xf32> to vector<1x32xf32>
    %5 = vector.extract_strided_slice %1 {offsets = [1, 0], sizes = [1, 32], strides = [1, 1]} : vector<2x32xf32> to vector<1x32xf32>
    %c0_3 = arith.constant 0 : index
    %c0_4 = arith.constant 0 : index
    %c0_5 = arith.constant 0 : index
    %6 = vector.load %arg2[%c0_3, %c0_4, %c0_5] : memref<1x16x32xf32, #tpu.memory_space<vmem>>, vector<1x16x32xf32>
    %7 = vector.shape_cast %6 : vector<1x16x32xf32> to vector<16x32xf32>
    %cst = arith.constant 0.000000e+00 : f32
    %8 = vector.broadcast %cst : f32 to vector<16x1xf32>
    %9 = vector.extract_strided_slice %7 {offsets = [0, 0], sizes = [16, 31], strides = [1, 1]} : vector<16x32xf32> to vector<16x31xf32>
    %10 = tpu.concatenate %8, %9 in 1 : vector<16x1xf32>, vector<16x31xf32> -> vector<16x32xf32>
    %11 = vector.broadcast %4 : vector<1x32xf32> to vector<16x32xf32>
    %12 = arith.mulf %10, %11 : vector<16x32xf32>
    %13 = vector.extract_strided_slice %7 {offsets = [0, 1], sizes = [16, 31], strides = [1, 1]} : vector<16x32xf32> to vector<16x31xf32>
    %14 = tpu.concatenate %13, %8 in 1 : vector<16x31xf32>, vector<16x1xf32> -> vector<16x32xf32>
    %15 = vector.broadcast %5 : vector<1x32xf32> to vector<16x32xf32>
    %16 = arith.mulf %14, %15 : vector<16x32xf32>
    %c0_6 = arith.constant 0 : index
    %c0_7 = arith.constant 0 : index
    %c0_8 = arith.constant 0 : index
    %17 = vector.load %arg13[%c0_6, %c0_7, %c0_8] : memref<3x32x16xbf16, #tpu.memory_space<vmem>>, vector<1x32x16xbf16>
    %18 = vector.shape_cast %17 : vector<1x32x16xbf16> to vector<32x16xbf16>
    %19 = arith.truncf %12 : vector<16x32xf32> to vector<16x32xbf16>
    %cst_9 = arith.constant dense<0.000000e+00> : vector<32x32xf32>
    %20 = tpu.matmul %18, %19, %cst_9 {dimension_numbers = #tpu.dot_dimension_numbers<[1], [0], [0], [1], [0, 0, 1, 1], [], []>} : vector<32x16xbf16>, vector<16x32xbf16>, vector<32x32xf32> -> vector<32x32xf32>
    %c1 = arith.constant 1 : index
    %c0_10 = arith.constant 0 : index
    %c0_11 = arith.constant 0 : index
    %21 = vector.load %arg13[%c1, %c0_10, %c0_11] : memref<3x32x16xbf16, #tpu.memory_space<vmem>>, vector<1x32x16xbf16>
    %22 = vector.shape_cast %21 : vector<1x32x16xbf16> to vector<32x16xbf16>
    %23 = arith.truncf %7 : vector<16x32xf32> to vector<16x32xbf16>
    %cst_12 = arith.constant dense<0.000000e+00> : vector<32x32xf32>
    %24 = tpu.matmul %22, %23, %cst_12 {dimension_numbers = #tpu.dot_dimension_numbers<[1], [0], [0], [1], [0, 0, 1, 1], [], []>} : vector<32x16xbf16>, vector<16x32xbf16>, vector<32x32xf32> -> vector<32x32xf32>
    %25 = arith.addf %20, %24 : vector<32x32xf32>
    %c2 = arith.constant 2 : index
    %c0_13 = arith.constant 0 : index
    %c0_14 = arith.constant 0 : index
    %26 = vector.load %arg13[%c2, %c0_13, %c0_14] : memref<3x32x16xbf16, #tpu.memory_space<vmem>>, vector<1x32x16xbf16>
    %27 = vector.shape_cast %26 : vector<1x32x16xbf16> to vector<32x16xbf16>
    %28 = arith.truncf %16 : vector<16x32xf32> to vector<16x32xbf16>
    %cst_15 = arith.constant dense<0.000000e+00> : vector<32x32xf32>
    %29 = tpu.matmul %27, %28, %cst_15 {dimension_numbers = #tpu.dot_dimension_numbers<[1], [0], [0], [1], [0, 0, 1, 1], [], []>} : vector<32x16xbf16>, vector<16x32xbf16>, vector<32x32xf32> -> vector<32x32xf32>
    %30 = arith.addf %25, %29 : vector<32x32xf32>
    %c0_16 = arith.constant 0 : index
    %c0_17 = arith.constant 0 : index
    %31 = vector.load %arg14[%c0_16, %c0_17] : memref<32x1xf32, #tpu.memory_space<vmem>>, vector<32x1xf32>
    %32 = vector.broadcast %31 : vector<32x1xf32> to vector<32x32xf32>
    %33 = arith.addf %30, %32 : vector<32x32xf32>
    %cst_18 = arith.constant 0.000000e+00 : f32
    %34 = vector.broadcast %cst_18 : f32 to vector<32x32xf32>
    %35 = arith.cmpf ogt, %33, %34 : vector<32x32xf32>
    %cst_19 = arith.constant 2.000000e-01 : f32
    %36 = vector.broadcast %cst_19 : f32 to vector<32x32xf32>
    %37 = arith.mulf %36, %33 : vector<32x32xf32>
    %38 = arith.select %35, %33, %37 : vector<32x32xi1>, vector<32x32xf32>
    %cst_20 = arith.constant 0.000000e+00 : f32
    %39 = vector.broadcast %cst_20 : f32 to vector<32x1xf32>
    %40 = vector.extract_strided_slice %38 {offsets = [0, 0], sizes = [32, 31], strides = [1, 1]} : vector<32x32xf32> to vector<32x31xf32>
    %41 = tpu.concatenate %39, %40 in 1 : vector<32x1xf32>, vector<32x31xf32> -> vector<32x32xf32>
    %42 = vector.broadcast %4 : vector<1x32xf32> to vector<32x32xf32>
    %43 = arith.mulf %41, %42 : vector<32x32xf32>
    %44 = vector.extract_strided_slice %38 {offsets = [0, 1], sizes = [32, 31], strides = [1, 1]} : vector<32x32xf32> to vector<32x31xf32>
    %45 = tpu.concatenate %44, %39 in 1 : vector<32x31xf32>, vector<32x1xf32> -> vector<32x32xf32>
    %46 = vector.broadcast %5 : vector<1x32xf32> to vector<32x32xf32>
    %47 = arith.mulf %45, %46 : vector<32x32xf32>
    %c0_21 = arith.constant 0 : index
    %c0_22 = arith.constant 0 : index
    %c0_23 = arith.constant 0 : index
    %48 = vector.load %arg15[%c0_21, %c0_22, %c0_23] : memref<3x32x32xbf16, #tpu.memory_space<vmem>>, vector<1x32x32xbf16>
    %49 = vector.shape_cast %48 : vector<1x32x32xbf16> to vector<32x32xbf16>
    %50 = arith.truncf %43 : vector<32x32xf32> to vector<32x32xbf16>
    %cst_24 = arith.constant dense<0.000000e+00> : vector<32x32xf32>
    %51 = tpu.matmul %49, %50, %cst_24 {dimension_numbers = #tpu.dot_dimension_numbers<[1], [0], [0], [1], [0, 0, 1, 1], [], []>} : vector<32x32xbf16>, vector<32x32xbf16>, vector<32x32xf32> -> vector<32x32xf32>
    %c1_25 = arith.constant 1 : index
    %c0_26 = arith.constant 0 : index
    %c0_27 = arith.constant 0 : index
    %52 = vector.load %arg15[%c1_25, %c0_26, %c0_27] : memref<3x32x32xbf16, #tpu.memory_space<vmem>>, vector<1x32x32xbf16>
    %53 = vector.shape_cast %52 : vector<1x32x32xbf16> to vector<32x32xbf16>
    %54 = arith.truncf %38 : vector<32x32xf32> to vector<32x32xbf16>
    %cst_28 = arith.constant dense<0.000000e+00> : vector<32x32xf32>
    %55 = tpu.matmul %53, %54, %cst_28 {dimension_numbers = #tpu.dot_dimension_numbers<[1], [0], [0], [1], [0, 0, 1, 1], [], []>} : vector<32x32xbf16>, vector<32x32xbf16>, vector<32x32xf32> -> vector<32x32xf32>
    %56 = arith.addf %51, %55 : vector<32x32xf32>
    %c2_29 = arith.constant 2 : index
    %c0_30 = arith.constant 0 : index
    %c0_31 = arith.constant 0 : index
    %57 = vector.load %arg15[%c2_29, %c0_30, %c0_31] : memref<3x32x32xbf16, #tpu.memory_space<vmem>>, vector<1x32x32xbf16>
    %58 = vector.shape_cast %57 : vector<1x32x32xbf16> to vector<32x32xbf16>
    %59 = arith.truncf %47 : vector<32x32xf32> to vector<32x32xbf16>
    %cst_32 = arith.constant dense<0.000000e+00> : vector<32x32xf32>
    %60 = tpu.matmul %58, %59, %cst_32 {dimension_numbers = #tpu.dot_dimension_numbers<[1], [0], [0], [1], [0, 0, 1, 1], [], []>} : vector<32x32xbf16>, vector<32x32xbf16>, vector<32x32xf32> -> vector<32x32xf32>
    %61 = arith.addf %56, %60 : vector<32x32xf32>
    %c0_33 = arith.constant 0 : index
    %c0_34 = arith.constant 0 : index
    %62 = vector.load %arg16[%c0_33, %c0_34] : memref<32x1xf32, #tpu.memory_space<vmem>>, vector<32x1xf32>
    %63 = vector.broadcast %62 : vector<32x1xf32> to vector<32x32xf32>
    %64 = arith.addf %61, %63 : vector<32x32xf32>
    %cst_35 = arith.constant 0.000000e+00 : f32
    %65 = vector.broadcast %cst_35 : f32 to vector<32x32xf32>
    %66 = arith.cmpf ogt, %64, %65 : vector<32x32xf32>
    %cst_36 = arith.constant 2.000000e-01 : f32
    %67 = vector.broadcast %cst_36 : f32 to vector<32x32xf32>
    %68 = arith.mulf %67, %64 : vector<32x32xf32>
    %69 = arith.select %66, %64, %68 : vector<32x32xi1>, vector<32x32xf32>
    %cst_37 = arith.constant 0.000000e+00 : f32
    %70 = vector.broadcast %cst_37 : f32 to vector<32x1xf32>
    %71 = vector.extract_strided_slice %69 {offsets = [0, 0], sizes = [32, 31], strides = [1, 1]} : vector<32x32xf32> to vector<32x31xf32>
    %72 = tpu.concatenate %70, %71 in 1 : vector<32x1xf32>, vector<32x31xf32> -> vector<32x32xf32>
    %73 = vector.broadcast %4 : vector<1x32xf32> to vector<32x32xf32>
    %74 = arith.mulf %72, %73 : vector<32x32xf32>
    %75 = vector.extract_strided_slice %69 {offsets = [0, 1], sizes = [32, 31], strides = [1, 1]} : vector<32x32xf32> to vector<32x31xf32>
    %76 = tpu.concatenate %75, %70 in 1 : vector<32x31xf32>, vector<32x1xf32> -> vector<32x32xf32>
    %77 = vector.broadcast %5 : vector<1x32xf32> to vector<32x32xf32>
    %78 = arith.mulf %76, %77 : vector<32x32xf32>
    %c0_38 = arith.constant 0 : index
    %c0_39 = arith.constant 0 : index
    %c0_40 = arith.constant 0 : index
    %79 = vector.load %arg17[%c0_38, %c0_39, %c0_40] : memref<3x32x32xbf16, #tpu.memory_space<vmem>>, vector<1x32x32xbf16>
    %80 = vector.shape_cast %79 : vector<1x32x32xbf16> to vector<32x32xbf16>
    %81 = arith.truncf %74 : vector<32x32xf32> to vector<32x32xbf16>
    %cst_41 = arith.constant dense<0.000000e+00> : vector<32x32xf32>
    %82 = tpu.matmul %80, %81, %cst_41 {dimension_numbers = #tpu.dot_dimension_numbers<[1], [0], [0], [1], [0, 0, 1, 1], [], []>} : vector<32x32xbf16>, vector<32x32xbf16>, vector<32x32xf32> -> vector<32x32xf32>
    %c1_42 = arith.constant 1 : index
    %c0_43 = arith.constant 0 : index
    %c0_44 = arith.constant 0 : index
    %83 = vector.load %arg17[%c1_42, %c0_43, %c0_44] : memref<3x32x32xbf16, #tpu.memory_space<vmem>>, vector<1x32x32xbf16>
    %84 = vector.shape_cast %83 : vector<1x32x32xbf16> to vector<32x32xbf16>
    %85 = arith.truncf %69 : vector<32x32xf32> to vector<32x32xbf16>
    %cst_45 = arith.constant dense<0.000000e+00> : vector<32x32xf32>
    %86 = tpu.matmul %84, %85, %cst_45 {dimension_numbers = #tpu.dot_dimension_numbers<[1], [0], [0], [1], [0, 0, 1, 1], [], []>} : vector<32x32xbf16>, vector<32x32xbf16>, vector<32x32xf32> -> vector<32x32xf32>
    %87 = arith.addf %82, %86 : vector<32x32xf32>
    %c2_46 = arith.constant 2 : index
    %c0_47 = arith.constant 0 : index
    %c0_48 = arith.constant 0 : index
    %88 = vector.load %arg17[%c2_46, %c0_47, %c0_48] : memref<3x32x32xbf16, #tpu.memory_space<vmem>>, vector<1x32x32xbf16>
    %89 = vector.shape_cast %88 : vector<1x32x32xbf16> to vector<32x32xbf16>
    %90 = arith.truncf %78 : vector<32x32xf32> to vector<32x32xbf16>
    %cst_49 = arith.constant dense<0.000000e+00> : vector<32x32xf32>
    %91 = tpu.matmul %89, %90, %cst_49 {dimension_numbers = #tpu.dot_dimension_numbers<[1], [0], [0], [1], [0, 0, 1, 1], [], []>} : vector<32x32xbf16>, vector<32x32xbf16>, vector<32x32xf32> -> vector<32x32xf32>
    %92 = arith.addf %87, %91 : vector<32x32xf32>
    %c0_50 = arith.constant 0 : index
    %c0_51 = arith.constant 0 : index
    %93 = vector.load %arg18[%c0_50, %c0_51] : memref<32x1xf32, #tpu.memory_space<vmem>>, vector<32x1xf32>
    %94 = vector.broadcast %93 : vector<32x1xf32> to vector<32x32xf32>
    %95 = arith.addf %92, %94 : vector<32x32xf32>
    %cst_52 = arith.constant 0.000000e+00 : f32
    %96 = vector.broadcast %cst_52 : f32 to vector<32x32xf32>
    %97 = arith.cmpf ogt, %95, %96 : vector<32x32xf32>
    %cst_53 = arith.constant 2.000000e-01 : f32
    %98 = vector.broadcast %cst_53 : f32 to vector<32x32xf32>
    %99 = arith.mulf %98, %95 : vector<32x32xf32>
    %100 = arith.select %97, %95, %99 : vector<32x32xi1>, vector<32x32xf32>
    %c0_54 = arith.constant 0 : index
    %c0_55 = arith.constant 0 : index
    %101 = vector.load %arg5[%c0_54, %c0_55] : memref<32x2xf32, #tpu.memory_space<vmem>>, vector<32x2xf32>
    %cst_56 = arith.constant dense<0.000000e+00> : vector<32x2xf32>
    %102 = tpu.matmul %100, %101, %cst_56 {dimension_numbers = #tpu.dot_dimension_numbers<[1], [0], [0], [1], [0, 0, 1, 1], [], []>} : vector<32x32xf32>, vector<32x2xf32>, vector<32x2xf32> -> vector<32x2xf32>
    %103 = arith.mulf %100, %100 : vector<32x32xf32>
    %cst_57 = arith.constant dense<0.000000e+00> : vector<32x2xf32>
    %104 = tpu.matmul %103, %101, %cst_57 {dimension_numbers = #tpu.dot_dimension_numbers<[1], [0], [0], [1], [0, 0, 1, 1], [], []>} : vector<32x32xf32>, vector<32x2xf32>, vector<32x2xf32> -> vector<32x2xf32>
    %cst_58 = arith.constant 6.250000e-02 : f32
    %105 = vector.broadcast %cst_58 : f32 to vector<32x2xf32>
    %106 = arith.mulf %102, %105 : vector<32x2xf32>
    %107 = arith.mulf %106, %102 : vector<32x2xf32>
    %108 = arith.subf %104, %107 : vector<32x2xf32>
    %cst_59 = arith.constant 0.000000e+00 : f32
    %109 = vector.broadcast %cst_59 : f32 to vector<32x2xf32>
    %110 = arith.maximumf %108, %109 : vector<32x2xf32>
    %cst_60 = arith.constant 0.0666666701 : f32
    %111 = vector.broadcast %cst_60 : f32 to vector<32x2xf32>
    %112 = arith.mulf %110, %111 : vector<32x2xf32>
    %113 = math.sqrt %112 : vector<32x2xf32>
    %c0_61 = arith.constant 0 : index
    %c0_62 = arith.constant 0 : index
    %114 = vector.load %arg19[%c0_61, %c0_62] : memref<32x32xbf16, #tpu.memory_space<vmem>>, vector<32x32xbf16>
    %115 = arith.truncf %106 : vector<32x2xf32> to vector<32x2xbf16>
    %cst_63 = arith.constant dense<0.000000e+00> : vector<32x2xf32>
    %116 = tpu.matmul %114, %115, %cst_63 {dimension_numbers = #tpu.dot_dimension_numbers<[1], [0], [0], [1], [0, 0, 1, 1], [], []>} : vector<32x32xbf16>, vector<32x2xbf16>, vector<32x2xf32> -> vector<32x2xf32>
    %c0_64 = arith.constant 0 : index
    %c0_65 = arith.constant 0 : index
    %117 = vector.load %arg20[%c0_64, %c0_65] : memref<32x32xbf16, #tpu.memory_space<vmem>>, vector<32x32xbf16>
    %118 = arith.truncf %113 : vector<32x2xf32> to vector<32x2xbf16>
    %cst_66 = arith.constant dense<0.000000e+00> : vector<32x2xf32>
    %119 = tpu.matmul %117, %118, %cst_66 {dimension_numbers = #tpu.dot_dimension_numbers<[1], [0], [0], [1], [0, 0, 1, 1], [], []>} : vector<32x32xbf16>, vector<32x2xbf16>, vector<32x2xf32> -> vector<32x2xf32>
    %120 = arith.addf %116, %119 : vector<32x2xf32>
    %c0_67 = arith.constant 0 : index
    %c0_68 = arith.constant 0 : index
    %121 = vector.load %arg21[%c0_67, %c0_68] : memref<32x1xf32, #tpu.memory_space<vmem>>, vector<32x1xf32>
    %122 = vector.broadcast %121 : vector<32x1xf32> to vector<32x2xf32>
    %123 = arith.addf %120, %122 : vector<32x2xf32>
    %cst_69 = arith.constant 0.000000e+00 : f32
    %124 = vector.broadcast %cst_69 : f32 to vector<32x2xf32>
    %125 = arith.cmpf ogt, %123, %124 : vector<32x2xf32>
    %cst_70 = arith.constant 2.000000e-01 : f32
    %126 = vector.broadcast %cst_70 : f32 to vector<32x2xf32>
    %127 = arith.mulf %126, %123 : vector<32x2xf32>
    %128 = arith.select %125, %123, %127 : vector<32x2xi1>, vector<32x2xf32>
    %c0_71 = arith.constant 0 : index
    %c0_72 = arith.constant 0 : index
    %129 = vector.load %arg22[%c0_71, %c0_72] : memref<32x32xbf16, #tpu.memory_space<vmem>>, vector<32x32xbf16>
    %130 = arith.truncf %128 : vector<32x2xf32> to vector<32x2xbf16>
    %cst_73 = arith.constant dense<0.000000e+00> : vector<32x2xf32>
    %131 = tpu.matmul %129, %130, %cst_73 {dimension_numbers = #tpu.dot_dimension_numbers<[1], [0], [0], [1], [0, 0, 1, 1], [], []>} : vector<32x32xbf16>, vector<32x2xbf16>, vector<32x2xf32> -> vector<32x2xf32>
    %c0_74 = arith.constant 0 : index
    %c0_75 = arith.constant 0 : index
    %132 = vector.load %arg23[%c0_74, %c0_75] : memref<32x1xf32, #tpu.memory_space<vmem>>, vector<32x1xf32>
    %133 = vector.broadcast %132 : vector<32x1xf32> to vector<32x2xf32>
    %134 = arith.addf %131, %133 : vector<32x2xf32>
    %c0_76 = arith.constant 0 : index
    %c0_77 = arith.constant 0 : index
    %c0_78 = arith.constant 0 : index
    %135 = vector.load %arg30[%c0_76, %c0_77, %c0_78] : memref<1x32x2xf32, #tpu.memory_space<vmem>>, vector<1x32x2xf32>
    %136 = vector.shape_cast %135 : vector<1x32x2xf32> to vector<32x2xf32>
    %137 = vector.shape_cast %134 : vector<32x2xf32> to vector<1x32x2xf32>
    tpu.vector_store %arg30[%c0_76, %c0_77, %c0_78], %137 {strides = array<i32>} : memref<1x32x2xf32, #tpu.memory_space<vmem>>, vector<1x32x2xf32>,
    %c0_79 = arith.constant 0 : index
    %c0_80 = arith.constant 0 : index
    %c0_81 = arith.constant 0 : index
    %138 = vector.load %arg1[%c0_79, %c0_80, %c0_81] : memref<1x32x16xf32, #tpu.memory_space<vmem>>, vector<1x32x16xf32>
    %139 = vector.shape_cast %138 : vector<1x32x16xf32> to vector<32x16xf32>
    %cst_82 = arith.constant 0.000000e+00 : f32
    %140 = vector.broadcast %cst_82 : f32 to vector<32x1xf32>
    %141 = vector.extract_strided_slice %139 {offsets = [0, 0], sizes = [32, 15], strides = [1, 1]} : vector<32x16xf32> to vector<32x15xf32>
    %142 = tpu.concatenate %140, %141 in 1 : vector<32x1xf32>, vector<32x15xf32> -> vector<32x16xf32>
    %143 = vector.broadcast %2 : vector<1x16xf32> to vector<32x16xf32>
    %144 = arith.mulf %142, %143 : vector<32x16xf32>
    %145 = vector.extract_strided_slice %139 {offsets = [0, 1], sizes = [32, 15], strides = [1, 1]} : vector<32x16xf32> to vector<32x15xf32>
    %146 = tpu.concatenate %145, %140 in 1 : vector<32x15xf32>, vector<32x1xf32> -> vector<32x16xf32>
    %147 = vector.broadcast %3 : vector<1x16xf32> to vector<32x16xf32>
    %148 = arith.mulf %146, %147 : vector<32x16xf32>
    %c0_83 = arith.constant 0 : index
    %c0_84 = arith.constant 0 : index
    %c0_85 = arith.constant 0 : index
    %149 = vector.load %arg7[%c0_83, %c0_84, %c0_85] : memref<3x32x32xbf16, #tpu.memory_space<vmem>>, vector<1x32x32xbf16>
    %150 = vector.shape_cast %149 : vector<1x32x32xbf16> to vector<32x32xbf16>
    %151 = arith.truncf %144 : vector<32x16xf32> to vector<32x16xbf16>
    %cst_86 = arith.constant dense<0.000000e+00> : vector<32x16xf32>
    %152 = tpu.matmul %150, %151, %cst_86 {dimension_numbers = #tpu.dot_dimension_numbers<[1], [0], [0], [1], [0, 0, 1, 1], [], []>} : vector<32x32xbf16>, vector<32x16xbf16>, vector<32x16xf32> -> vector<32x16xf32>
    %c1_87 = arith.constant 1 : index
    %c0_88 = arith.constant 0 : index
    %c0_89 = arith.constant 0 : index
    %153 = vector.load %arg7[%c1_87, %c0_88, %c0_89] : memref<3x32x32xbf16, #tpu.memory_space<vmem>>, vector<1x32x32xbf16>
    %154 = vector.shape_cast %153 : vector<1x32x32xbf16> to vector<32x32xbf16>
    %155 = arith.truncf %139 : vector<32x16xf32> to vector<32x16xbf16>
    %cst_90 = arith.constant dense<0.000000e+00> : vector<32x16xf32>
    %156 = tpu.matmul %154, %155, %cst_90 {dimension_numbers = #tpu.dot_dimension_numbers<[1], [0], [0], [1], [0, 0, 1, 1], [], []>} : vector<32x32xbf16>, vector<32x16xbf16>, vector<32x16xf32> -> vector<32x16xf32>
    %157 = arith.addf %152, %156 : vector<32x16xf32>
    %c2_91 = arith.constant 2 : index
    %c0_92 = arith.constant 0 : index
    %c0_93 = arith.constant 0 : index
    %158 = vector.load %arg7[%c2_91, %c0_92, %c0_93] : memref<3x32x32xbf16, #tpu.memory_space<vmem>>, vector<1x32x32xbf16>
    %159 = vector.shape_cast %158 : vector<1x32x32xbf16> to vector<32x32xbf16>
    %160 = arith.truncf %148 : vector<32x16xf32> to vector<32x16xbf16>
    %cst_94 = arith.constant dense<0.000000e+00> : vector<32x16xf32>
    %161 = tpu.matmul %159, %160, %cst_94 {dimension_numbers = #tpu.dot_dimension_numbers<[1], [0], [0], [1], [0, 0, 1, 1], [], []>} : vector<32x32xbf16>, vector<32x16xbf16>, vector<32x16xf32> -> vector<32x16xf32>
    %162 = arith.addf %157, %161 : vector<32x16xf32>
    %c0_95 = arith.constant 0 : index
    %c0_96 = arith.constant 0 : index
    %163 = vector.load %arg8[%c0_95, %c0_96] : memref<32x1xf32, #tpu.memory_space<vmem>>, vector<32x1xf32>
    %164 = vector.broadcast %163 : vector<32x1xf32> to vector<32x16xf32>
    %165 = arith.addf %162, %164 : vector<32x16xf32>
    %cst_97 = arith.constant 0.000000e+00 : f32
    %166 = vector.broadcast %cst_97 : f32 to vector<32x16xf32>
    %167 = arith.cmpf ogt, %165, %166 : vector<32x16xf32>
    %cst_98 = arith.constant 2.000000e-01 : f32
    %168 = vector.broadcast %cst_98 : f32 to vector<32x16xf32>
    %169 = arith.mulf %168, %165 : vector<32x16xf32>
    %170 = arith.select %167, %165, %169 : vector<32x16xi1>, vector<32x16xf32>
    %cst_99 = arith.constant 0.000000e+00 : f32
    %171 = vector.broadcast %cst_99 : f32 to vector<32x1xf32>
    %172 = vector.extract_strided_slice %170 {offsets = [0, 0], sizes = [32, 15], strides = [1, 1]} : vector<32x16xf32> to vector<32x15xf32>
    %173 = tpu.concatenate %171, %172 in 1 : vector<32x1xf32>, vector<32x15xf32> -> vector<32x16xf32>
    %174 = vector.broadcast %2 : vector<1x16xf32> to vector<32x16xf32>
    %175 = arith.mulf %173, %174 : vector<32x16xf32>
    %176 = vector.extract_strided_slice %170 {offsets = [0, 1], sizes = [32, 15], strides = [1, 1]} : vector<32x16xf32> to vector<32x15xf32>
    %177 = tpu.concatenate %176, %171 in 1 : vector<32x15xf32>, vector<32x1xf32> -> vector<32x16xf32>
    %178 = vector.broadcast %3 : vector<1x16xf32> to vector<32x16xf32>
    %179 = arith.mulf %177, %178 : vector<32x16xf32>
    %c0_100 = arith.constant 0 : index
    %c0_101 = arith.constant 0 : index
    %c0_102 = arith.constant 0 : index
    %180 = vector.load %arg9[%c0_100, %c0_101, %c0_102] : memref<3x32x32xbf16, #tpu.memory_space<vmem>>, vector<1x32x32xbf16>
    %181 = vector.shape_cast %180 : vector<1x32x32xbf16> to vector<32x32xbf16>
    %182 = arith.truncf %175 : vector<32x16xf32> to vector<32x16xbf16>
    %cst_103 = arith.constant dense<0.000000e+00> : vector<32x16xf32>
    %183 = tpu.matmul %181, %182, %cst_103 {dimension_numbers = #tpu.dot_dimension_numbers<[1], [0], [0], [1], [0, 0, 1, 1], [], []>} : vector<32x32xbf16>, vector<32x16xbf16>, vector<32x16xf32> -> vector<32x16xf32>
    %c1_104 = arith.constant 1 : index
    %c0_105 = arith.constant 0 : index
    %c0_106 = arith.constant 0 : index
    %184 = vector.load %arg9[%c1_104, %c0_105, %c0_106] : memref<3x32x32xbf16, #tpu.memory_space<vmem>>, vector<1x32x32xbf16>
    %185 = vector.shape_cast %184 : vector<1x32x32xbf16> to vector<32x32xbf16>
    %186 = arith.truncf %170 : vector<32x16xf32> to vector<32x16xbf16>
    %cst_107 = arith.constant dense<0.000000e+00> : vector<32x16xf32>
    %187 = tpu.matmul %185, %186, %cst_107 {dimension_numbers = #tpu.dot_dimension_numbers<[1], [0], [0], [1], [0, 0, 1, 1], [], []>} : vector<32x32xbf16>, vector<32x16xbf16>, vector<32x16xf32> -> vector<32x16xf32>
    %188 = arith.addf %183, %187 : vector<32x16xf32>
    %c2_108 = arith.constant 2 : index
    %c0_109 = arith.constant 0 : index
    %c0_110 = arith.constant 0 : index
    %189 = vector.load %arg9[%c2_108, %c0_109, %c0_110] : memref<3x32x32xbf16, #tpu.memory_space<vmem>>, vector<1x32x32xbf16>
    %190 = vector.shape_cast %189 : vector<1x32x32xbf16> to vector<32x32xbf16>
    %191 = arith.truncf %179 : vector<32x16xf32> to vector<32x16xbf16>
    %cst_111 = arith.constant dense<0.000000e+00> : vector<32x16xf32>
    %192 = tpu.matmul %190, %191, %cst_111 {dimension_numbers = #tpu.dot_dimension_numbers<[1], [0], [0], [1], [0, 0, 1, 1], [], []>} : vector<32x32xbf16>, vector<32x16xbf16>, vector<32x16xf32> -> vector<32x16xf32>
    %193 = arith.addf %188, %192 : vector<32x16xf32>
    %c0_112 = arith.constant 0 : index
    %c0_113 = arith.constant 0 : index
    %194 = vector.load %arg10[%c0_112, %c0_113] : memref<32x1xf32, #tpu.memory_space<vmem>>, vector<32x1xf32>
    %195 = vector.broadcast %194 : vector<32x1xf32> to vector<32x16xf32>
    %196 = arith.addf %193, %195 : vector<32x16xf32>
    %cst_114 = arith.constant 0.000000e+00 : f32
    %197 = vector.broadcast %cst_114 : f32 to vector<32x16xf32>
    %198 = arith.cmpf ogt, %196, %197 : vector<32x16xf32>
    %cst_115 = arith.constant 2.000000e-01 : f32
    %199 = vector.broadcast %cst_115 : f32 to vector<32x16xf32>
    %200 = arith.mulf %199, %196 : vector<32x16xf32>
    %201 = arith.select %198, %196, %200 : vector<32x16xi1>, vector<32x16xf32>
    %cst_116 = arith.constant 0.000000e+00 : f32
    %202 = vector.broadcast %cst_116 : f32 to vector<32x1xf32>
    %203 = vector.extract_strided_slice %201 {offsets = [0, 0], sizes = [32, 15], strides = [1, 1]} : vector<32x16xf32> to vector<32x15xf32>
    %204 = tpu.concatenate %202, %203 in 1 : vector<32x1xf32>, vector<32x15xf32> -> vector<32x16xf32>
    %205 = vector.broadcast %2 : vector<1x16xf32> to vector<32x16xf32>
    %206 = arith.mulf %204, %205 : vector<32x16xf32>
    %207 = vector.extract_strided_slice %201 {offsets = [0, 1], sizes = [32, 15], strides = [1, 1]} : vector<32x16xf32> to vector<32x15xf32>
    %208 = tpu.concatenate %207, %202 in 1 : vector<32x15xf32>, vector<32x1xf32> -> vector<32x16xf32>
    %209 = vector.broadcast %3 : vector<1x16xf32> to vector<32x16xf32>
    %210 = arith.mulf %208, %209 : vector<32x16xf32>
    %c0_117 = arith.constant 0 : index
    %c0_118 = arith.constant 0 : index
    %c0_119 = arith.constant 0 : index
    %211 = vector.load %arg11[%c0_117, %c0_118, %c0_119] : memref<3x32x32xbf16, #tpu.memory_space<vmem>>, vector<1x32x32xbf16>
    %212 = vector.shape_cast %211 : vector<1x32x32xbf16> to vector<32x32xbf16>
    %213 = arith.truncf %206 : vector<32x16xf32> to vector<32x16xbf16>
    %cst_120 = arith.constant dense<0.000000e+00> : vector<32x16xf32>
    %214 = tpu.matmul %212, %213, %cst_120 {dimension_numbers = #tpu.dot_dimension_numbers<[1], [0], [0], [1], [0, 0, 1, 1], [], []>} : vector<32x32xbf16>, vector<32x16xbf16>, vector<32x16xf32> -> vector<32x16xf32>
    %c1_121 = arith.constant 1 : index
    %c0_122 = arith.constant 0 : index
    %c0_123 = arith.constant 0 : index
    %215 = vector.load %arg11[%c1_121, %c0_122, %c0_123] : memref<3x32x32xbf16, #tpu.memory_space<vmem>>, vector<1x32x32xbf16>
    %216 = vector.shape_cast %215 : vector<1x32x32xbf16> to vector<32x32xbf16>
    %217 = arith.truncf %201 : vector<32x16xf32> to vector<32x16xbf16>
    %cst_124 = arith.constant dense<0.000000e+00> : vector<32x16xf32>
    %218 = tpu.matmul %216, %217, %cst_124 {dimension_numbers = #tpu.dot_dimension_numbers<[1], [0], [0], [1], [0, 0, 1, 1], [], []>} : vector<32x32xbf16>, vector<32x16xbf16>, vector<32x16xf32> -> vector<32x16xf32>
    %219 = arith.addf %214, %218 : vector<32x16xf32>
    %c2_125 = arith.constant 2 : index
    %c0_126 = arith.constant 0 : index
    %c0_127 = arith.constant 0 : index
    %220 = vector.load %arg11[%c2_125, %c0_126, %c0_127] : memref<3x32x32xbf16, #tpu.memory_space<vmem>>, vector<1x32x32xbf16>
    %221 = vector.shape_cast %220 : vector<1x32x32xbf16> to vector<32x32xbf16>
    %222 = arith.truncf %210 : vector<32x16xf32> to vector<32x16xbf16>
    %cst_128 = arith.constant dense<0.000000e+00> : vector<32x16xf32>
    %223 = tpu.matmul %221, %222, %cst_128 {dimension_numbers = #tpu.dot_dimension_numbers<[1], [0], [0], [1], [0, 0, 1, 1], [], []>} : vector<32x32xbf16>, vector<32x16xbf16>, vector<32x16xf32> -> vector<32x16xf32>
    %224 = arith.addf %219, %223 : vector<32x16xf32>
    %c0_129 = arith.constant 0 : index
    %c0_130 = arith.constant 0 : index
    %225 = vector.load %arg12[%c0_129, %c0_130] : memref<32x1xf32, #tpu.memory_space<vmem>>, vector<32x1xf32>
    %226 = vector.broadcast %225 : vector<32x1xf32> to vector<32x16xf32>
    %227 = arith.addf %224, %226 : vector<32x16xf32>
    %cst_131 = arith.constant 0.000000e+00 : f32
    %228 = vector.broadcast %cst_131 : f32 to vector<32x16xf32>
    %229 = arith.cmpf ogt, %227, %228 : vector<32x16xf32>
    %cst_132 = arith.constant 2.000000e-01 : f32
    %230 = vector.broadcast %cst_132 : f32 to vector<32x16xf32>
    %231 = arith.mulf %230, %227 : vector<32x16xf32>
    %232 = arith.select %229, %227, %231 : vector<32x16xi1>, vector<32x16xf32>
    %233 = arith.addf %139, %232 : vector<32x16xf32>
    %c0_133 = arith.constant 0 : index
    %c0_134 = arith.constant 0 : index
    %234 = vector.load %arg25[%c0_133, %c0_134] : memref<32x32xbf16, #tpu.memory_space<vmem>>, vector<32x32xbf16>
    %235 = arith.truncf %134 : vector<32x2xf32> to vector<32x2xbf16>
    %cst_135 = arith.constant dense<0.000000e+00> : vector<32x2xf32>
    %236 = tpu.matmul %234, %235, %cst_135 {dimension_numbers = #tpu.dot_dimension_numbers<[1], [0], [0], [1], [0, 0, 1, 1], [], []>} : vector<32x32xbf16>, vector<32x2xbf16>, vector<32x2xf32> -> vector<32x2xf32>
    %c0_136 = arith.constant 0 : index
    %c0_137 = arith.constant 0 : index
    %237 = vector.load %arg6[%c0_136, %c0_137] : memref<2x16xf32, #tpu.memory_space<vmem>>, vector<2x16xf32>
    %cst_138 = arith.constant dense<0.000000e+00> : vector<32x16xf32>
    %238 = tpu.matmul %236, %237, %cst_138 {dimension_numbers = #tpu.dot_dimension_numbers<[1], [0], [0], [1], [0, 0, 1, 1], [], []>} : vector<32x2xf32>, vector<2x16xf32>, vector<32x16xf32> -> vector<32x16xf32>
    %c0_139 = arith.constant 0 : index
    %c0_140 = arith.constant 0 : index
    %239 = vector.load %arg24[%c0_139, %c0_140] : memref<32x32xbf16, #tpu.memory_space<vmem>>, vector<32x32xbf16>
    %240 = arith.truncf %233 : vector<32x16xf32> to vector<32x16xbf16>
    %cst_141 = arith.constant dense<0.000000e+00> : vector<32x16xf32>
    %241 = tpu.matmul %239, %240, %cst_141 {dimension_numbers = #tpu.dot_dimension_numbers<[1], [0], [0], [1], [0, 0, 1, 1], [], []>} : vector<32x32xbf16>, vector<32x16xbf16>, vector<32x16xf32> -> vector<32x16xf32>
    %242 = arith.addf %241, %238 : vector<32x16xf32>
    %c0_142 = arith.constant 0 : index
    %c0_143 = arith.constant 0 : index
    %243 = vector.load %arg26[%c0_142, %c0_143] : memref<32x1xf32, #tpu.memory_space<vmem>>, vector<32x1xf32>
    %244 = vector.broadcast %243 : vector<32x1xf32> to vector<32x16xf32>
    %245 = arith.addf %242, %244 : vector<32x16xf32>
    %cst_144 = arith.constant 0.000000e+00 : f32
    %246 = vector.broadcast %cst_144 : f32 to vector<32x16xf32>
    %247 = arith.cmpf ogt, %245, %246 : vector<32x16xf32>
    %cst_145 = arith.constant 2.000000e-01 : f32
    %248 = vector.broadcast %cst_145 : f32 to vector<32x16xf32>
    %249 = arith.mulf %248, %245 : vector<32x16xf32>
    %250 = arith.select %247, %245, %249 : vector<32x16xi1>, vector<32x16xf32>
    %c0_146 = arith.constant 0 : index
    %c0_147 = arith.constant 0 : index
    %251 = vector.load %arg27[%c0_146, %c0_147] : memref<32x32xbf16, #tpu.memory_space<vmem>>, vector<32x32xbf16>
    %252 = arith.truncf %250 : vector<32x16xf32> to vector<32x16xbf16>
    %cst_148 = arith.constant dense<0.000000e+00> : vector<32x16xf32>
    %253 = tpu.matmul %251, %252, %cst_148 {dimension_numbers = #tpu.dot_dimension_numbers<[1], [0], [0], [1], [0, 0, 1, 1], [], []>} : vector<32x32xbf16>, vector<32x16xbf16>, vector<32x16xf32> -> vector<32x16xf32>
    %c0_149 = arith.constant 0 : index
    %c0_150 = arith.constant 0 : index
    %254 = vector.load %arg28[%c0_149, %c0_150] : memref<32x1xf32, #tpu.memory_space<vmem>>, vector<32x1xf32>
    %255 = vector.broadcast %254 : vector<32x1xf32> to vector<32x16xf32>
    %256 = arith.addf %253, %255 : vector<32x16xf32>
    %c0_151 = arith.constant 0 : index
    %c0_152 = arith.constant 0 : index
    %c0_153 = arith.constant 0 : index
    %257 = vector.load %arg29[%c0_151, %c0_152, %c0_153] : memref<1x32x16xf32, #tpu.memory_space<vmem>>, vector<1x32x16xf32>
    %258 = vector.shape_cast %257 : vector<1x32x16xf32> to vector<32x16xf32>
    %259 = vector.shape_cast %256 : vector<32x16xf32> to vector<1x32x16xf32>
    tpu.vector_store %arg29[%c0_151, %c0_152, %c0_153], %259 {strides = array<i32>} : memref<1x32x16xf32, #tpu.memory_space<vmem>>, vector<1x32x16xf32>,
    return
  }
  func.func @transform_0(%arg0: i32) -> (i32, i32, i32) {
    %c0_i32 = arith.constant 0 : i32
    %c0_i32_0 = arith.constant 0 : i32
    %c0_i32_1 = arith.constant 0 : i32
    return %arg0, %c0_i32, %c0_i32_0 : i32, i32, i32
  }
  func.func @transform_1(%arg0: i32) -> (i32, i32, i32) {
    %c0_i32 = arith.constant 0 : i32
    %c0_i32_0 = arith.constant 0 : i32
    %c0_i32_1 = arith.constant 0 : i32
    return %arg0, %c0_i32, %c0_i32_0 : i32, i32, i32
  }
  func.func @transform_2(%arg0: i32) -> (i32, i32) {
    %c0_i32 = arith.constant 0 : i32
    %c0_i32_0 = arith.constant 0 : i32
    %c0_i32_1 = arith.constant 0 : i32
    return %c0_i32, %c0_i32_0 : i32, i32
  }
  func.func @transform_3(%arg0: i32) -> (i32, i32) {
    %c0_i32 = arith.constant 0 : i32
    %c0_i32_0 = arith.constant 0 : i32
    %c0_i32_1 = arith.constant 0 : i32
    return %c0_i32, %c0_i32_0 : i32, i32
  }
  func.func @transform_4(%arg0: i32) -> (i32, i32) {
    %c0_i32 = arith.constant 0 : i32
    %c0_i32_0 = arith.constant 0 : i32
    %c0_i32_1 = arith.constant 0 : i32
    return %c0_i32, %c0_i32_0 : i32, i32
  }
  func.func @transform_5(%arg0: i32) -> (i32, i32) {
    %c0_i32 = arith.constant 0 : i32
    %c0_i32_0 = arith.constant 0 : i32
    %c0_i32_1 = arith.constant 0 : i32
    return %c0_i32, %c0_i32_0 : i32, i32
  }
  func.func @transform_6(%arg0: i32) -> (i32, i32, i32) {
    %c0_i32 = arith.constant 0 : i32
    %c0_i32_0 = arith.constant 0 : i32
    %c0_i32_1 = arith.constant 0 : i32
    %c0_i32_2 = arith.constant 0 : i32
    return %c0_i32, %c0_i32_0, %c0_i32_1 : i32, i32, i32
  }
  func.func @transform_7(%arg0: i32) -> (i32, i32) {
    %c0_i32 = arith.constant 0 : i32
    %c0_i32_0 = arith.constant 0 : i32
    %c0_i32_1 = arith.constant 0 : i32
    return %c0_i32, %c0_i32_0 : i32, i32
  }
  func.func @transform_8(%arg0: i32) -> (i32, i32, i32) {
    %c0_i32 = arith.constant 0 : i32
    %c0_i32_0 = arith.constant 0 : i32
    %c0_i32_1 = arith.constant 0 : i32
    %c0_i32_2 = arith.constant 0 : i32
    return %c0_i32, %c0_i32_0, %c0_i32_1 : i32, i32, i32
  }
  func.func @transform_9(%arg0: i32) -> (i32, i32) {
    %c0_i32 = arith.constant 0 : i32
    %c0_i32_0 = arith.constant 0 : i32
    %c0_i32_1 = arith.constant 0 : i32
    return %c0_i32, %c0_i32_0 : i32, i32
  }
  func.func @transform_10(%arg0: i32) -> (i32, i32, i32) {
    %c0_i32 = arith.constant 0 : i32
    %c0_i32_0 = arith.constant 0 : i32
    %c0_i32_1 = arith.constant 0 : i32
    %c0_i32_2 = arith.constant 0 : i32
    return %c0_i32, %c0_i32_0, %c0_i32_1 : i32, i32, i32
  }
  func.func @transform_11(%arg0: i32) -> (i32, i32) {
    %c0_i32 = arith.constant 0 : i32
    %c0_i32_0 = arith.constant 0 : i32
    %c0_i32_1 = arith.constant 0 : i32
    return %c0_i32, %c0_i32_0 : i32, i32
  }
  func.func @transform_12(%arg0: i32) -> (i32, i32, i32) {
    %c0_i32 = arith.constant 0 : i32
    %c0_i32_0 = arith.constant 0 : i32
    %c0_i32_1 = arith.constant 0 : i32
    %c0_i32_2 = arith.constant 0 : i32
    return %c0_i32, %c0_i32_0, %c0_i32_1 : i32, i32, i32
  }
  func.func @transform_13(%arg0: i32) -> (i32, i32) {
    %c0_i32 = arith.constant 0 : i32
    %c0_i32_0 = arith.constant 0 : i32
    %c0_i32_1 = arith.constant 0 : i32
    return %c0_i32, %c0_i32_0 : i32, i32
  }
  func.func @transform_14(%arg0: i32) -> (i32, i32, i32) {
    %c0_i32 = arith.constant 0 : i32
    %c0_i32_0 = arith.constant 0 : i32
    %c0_i32_1 = arith.constant 0 : i32
    %c0_i32_2 = arith.constant 0 : i32
    return %c0_i32, %c0_i32_0, %c0_i32_1 : i32, i32, i32
  }
  func.func @transform_15(%arg0: i32) -> (i32, i32) {
    %c0_i32 = arith.constant 0 : i32
    %c0_i32_0 = arith.constant 0 : i32
    %c0_i32_1 = arith.constant 0 : i32
    return %c0_i32, %c0_i32_0 : i32, i32
  }
  func.func @transform_16(%arg0: i32) -> (i32, i32, i32) {
    %c0_i32 = arith.constant 0 : i32
    %c0_i32_0 = arith.constant 0 : i32
    %c0_i32_1 = arith.constant 0 : i32
    %c0_i32_2 = arith.constant 0 : i32
    return %c0_i32, %c0_i32_0, %c0_i32_1 : i32, i32, i32
  }
  func.func @transform_17(%arg0: i32) -> (i32, i32) {
    %c0_i32 = arith.constant 0 : i32
    %c0_i32_0 = arith.constant 0 : i32
    %c0_i32_1 = arith.constant 0 : i32
    return %c0_i32, %c0_i32_0 : i32, i32
  }
  func.func @transform_18(%arg0: i32) -> (i32, i32) {
    %c0_i32 = arith.constant 0 : i32
    %c0_i32_0 = arith.constant 0 : i32
    %c0_i32_1 = arith.constant 0 : i32
    return %c0_i32, %c0_i32_0 : i32, i32
  }
  func.func @transform_19(%arg0: i32) -> (i32, i32) {
    %c0_i32 = arith.constant 0 : i32
    %c0_i32_0 = arith.constant 0 : i32
    %c0_i32_1 = arith.constant 0 : i32
    return %c0_i32, %c0_i32_0 : i32, i32
  }
  func.func @transform_20(%arg0: i32) -> (i32, i32) {
    %c0_i32 = arith.constant 0 : i32
    %c0_i32_0 = arith.constant 0 : i32
    %c0_i32_1 = arith.constant 0 : i32
    return %c0_i32, %c0_i32_0 : i32, i32
  }
  func.func @transform_21(%arg0: i32) -> (i32, i32) {
    %c0_i32 = arith.constant 0 : i32
    %c0_i32_0 = arith.constant 0 : i32
    %c0_i32_1 = arith.constant 0 : i32
    return %c0_i32, %c0_i32_0 : i32, i32
  }
  func.func @transform_22(%arg0: i32) -> (i32, i32) {
    %c0_i32 = arith.constant 0 : i32
    %c0_i32_0 = arith.constant 0 : i32
    %c0_i32_1 = arith.constant 0 : i32
    return %c0_i32, %c0_i32_0 : i32, i32
  }
  func.func @transform_23(%arg0: i32) -> (i32, i32) {
    %c0_i32 = arith.constant 0 : i32
    %c0_i32_0 = arith.constant 0 : i32
    %c0_i32_1 = arith.constant 0 : i32
    return %c0_i32, %c0_i32_0 : i32, i32
  }
  func.func @transform_24(%arg0: i32) -> (i32, i32) {
    %c0_i32 = arith.constant 0 : i32
    %c0_i32_0 = arith.constant 0 : i32
    %c0_i32_1 = arith.constant 0 : i32
    return %c0_i32, %c0_i32_0 : i32, i32
  }
  func.func @transform_25(%arg0: i32) -> (i32, i32) {
    %c0_i32 = arith.constant 0 : i32
    %c0_i32_0 = arith.constant 0 : i32
    %c0_i32_1 = arith.constant 0 : i32
    return %c0_i32, %c0_i32_0 : i32, i32
  }
  func.func @transform_26(%arg0: i32) -> (i32, i32) {
    %c0_i32 = arith.constant 0 : i32
    %c0_i32_0 = arith.constant 0 : i32
    %c0_i32_1 = arith.constant 0 : i32
    return %c0_i32, %c0_i32_0 : i32, i32
  }
  func.func @transform_27(%arg0: i32) -> (i32, i32) {
    %c0_i32 = arith.constant 0 : i32
    %c0_i32_0 = arith.constant 0 : i32
    %c0_i32_1 = arith.constant 0 : i32
    return %c0_i32, %c0_i32_0 : i32, i32
  }
  func.func @transform_28(%arg0: i32) -> (i32, i32, i32) {
    %c0_i32 = arith.constant 0 : i32
    %c0_i32_0 = arith.constant 0 : i32
    %c0_i32_1 = arith.constant 0 : i32
    return %arg0, %c0_i32, %c0_i32_0 : i32, i32, i32
  }
  func.func @transform_29(%arg0: i32) -> (i32, i32, i32) {
    %c0_i32 = arith.constant 0 : i32
    %c0_i32_0 = arith.constant 0 : i32
    %c0_i32_1 = arith.constant 0 : i32
    return %arg0, %c0_i32, %c0_i32_0 : i32, i32, i32
  }
}

</mosaic_0001>

<bundles_post_ra>
// kernel: unit_ref_encoder_forward.1
= control target key start
LH: loop header
LB: loop body
LE: loop exit
PB: predicated region body
PF: predicated region fallthrough
CT: control target
= control target key end

     0   :  { %s3554_s3 = smov 1   ;;  %s3555_s7 = smov 12   ;;  %vm179_vm0 = vcmask 130048   ;;  %v3557_v6 = vmov 0   ;;  %v137_v11 = vlaneseq  ;;  %vm149_vm1 = vcmask 252928   ;;  %s4029_s0 = inlined_call_operand.smem [shape: u32[30], index: -1, kind: input, shape index: {}] }
   0x1   :  { %s2871_s6 = sld [smem:[%s4029_s0 + %s3554_s3]]   ;;  %s3556_s11 = smov 127   ;;  %3493 = vset.pattern.permute.xlu1 %v3557_v6  ;;  %3492 = vset.pattern.permute.xlu0 %v3557_v6  ;;  %vm134_vm2 = vcmask 7168   ;;  %vm482_vm3 = vcmask 261120  }
   0x2   :  { %s3597_s10 = sld [smem:[%s4029_s0 + %s3555_s7]]   ;;  %s3558_s12 = smov 13   ;;  %v3615_v12 = vshrl.u32 %v137_v11, 7 }
   0x3   :  { %s2883_s15 = sld [smem:[%s4029_s0 + %s3558_s12]]   ;;  %s3559_s16 = smov 3  }
   0x4   :  { %s2873_s19 = sld [smem:[%s4029_s0 + %s3559_s16]]   ;;  %v154_v13 = vsub.s32 1, %v3615_v12  ;;  %v139_v14 = vsub.s32 0, %v3615_v12  ;;  %s3560_s20 = smov 14  }
   0x5   :  { %s3644_s23 = sld [smem:[%s4029_s0 + %s3560_s20]]   ;;  %s3561_s24 = smov 15  }
   0x6   :  { %s2885_s27 = sld [smem:[%s4029_s0 + %s3561_s24]]   ;;  %s3562_s28 = smov 16  }
   0x7   :  { %v124_v0 = vld [vmem:[%s2871_s6] sm:$0xff]  ;;  %v125_v1 = vld [vmem:[%s2871_s6 + $0x8] sm:$0xff]  ;;  %s3688_s1 = sld [smem:[%s4029_s0 + %s3562_s28]]   ;;  %s3563_s2 = smov 17  }
   0x8   :  { %128 = vrot.lane.b32.xlu0 %v124_v0, %s3554_s3  ;;  %143 = vrot.lane.b32.xlu1 %v124_v0, %s3556_s11  ;;  %v168_v2 = vpack.c.bf16 %v125_v1, %v124_v0  ;;  %v3494_v3 = vld [vmem:[%s3597_s10 + $0x10] sm:$0xff]   ;;  %v3495_v4 = vld [vmem:[%s3597_s10 + $0x18] sm:$0xff]   ;;  %s2887_s6 = sld [smem:[%s4029_s0 + %s3563_s2]]   ;;  %s3564_s7 = smov 20  }
   0x9   :  { %3173 = vmatprep.mubr.msk.bf16.mxu0 %vm179_vm0, %v3494_v3  ;;  %v3496_v5 = vld [vmem:[%s3597_s10] sm:$0xff]   ;;  %v376_v7 = vld [vmem:[%s2883_s15 + $0x8] sm:$0xff]  ;;  %v377_v9 = vld [vmem:[%s2883_s15 + $0x10] sm:$0xff]  ;;  %s3713_s14 = sld [smem:[%s4029_s0]]   ;;  %s3572_s16 = smov 8  }
   0xa   :  { %3171 = vmatprep.subr.bf16.mxu0 %v168_v2  ;;  %v375_v8 = vld [vmem:[%s2883_s15] sm:$0xff]  ;;  %v378_v10 = vld [vmem:[%s2883_s15 + $0x18] sm:$0xff]  ;;  %v3497_v32 = vld [vmem:[%s3597_s10 + $0x8] sm:$0xff]   ;;  %s3565_s15 = smov 7   ;;  %s3573_s20 = smov 9  }
   0xb   :  { %3172 = vmatpush3.bf16.msra.mxu0 %v168_v2  ;;  %v123_v15 = vld [vmem:[%s2873_s19] sm:$0x3]  ;;  %v3499_v34 = vld [vmem:[%s3597_s10 + $0x28] sm:$0xff]   ;;  %v3500_v37 = vld [vmem:[%s3644_s23 + $0x10] sm:$0xff]   ;;  %s2877_s18 = sld [smem:[%s4029_s0 + %s3565_s15]]   ;;  %s3566_s19 = smov 4  }
   0xc   :  { %130 = vrot.lane.b32.xlu0 %v125_v1, %s3554_s3  ;;  %145 = vrot.lane.b32.xlu1 %v125_v1, %s3556_s11  ;;  %v3621_v17 = vrot.slane %v123_v15, %v154_v13  ;;  %v3626_v20 = vrot.slane %v123_v15, %v139_v14  ;;  %v3498_v33 = vld [vmem:[%s3597_s10 + $0x20] sm:$0xff]   ;;  %v3501_v58 = vld [vmem:[%s3644_s23 + $0x18] sm:$0xff]   ;;  %s2890_s10 = sld [smem:[%s4029_s0 + %s3564_s7]]   ;;  %s3574_s24 = smov 10  }
   0xd   :  { %3193 = vmatprep.mubr.msk.bf16.mxu1 %vm482_vm3, %v3500_v37  ;;  %v3502_v59 = vld [vmem:[%s3644_s23] sm:$0xff]   ;;  %v680_v61 = vld [vmem:[%s2885_s27 + $0x8] sm:$0xff]  ;;  %v681_v62 = vld [vmem:[%s2885_s27 + $0x10] sm:$0xff]  ;;  %s2874_s22 = sld [smem:[%s4029_s0 + %s3566_s19]]   ;;  %s3575_s28 = smov 22  }
   0xe   :  { %3174 = vmatmul.mubr.msk.bf16.vlgmr.msra.gmra.mrb[0].mxu0 %vm179_vm0, %v3495_v4  ;;  %v679_v60 = vld [vmem:[%s2885_s27] sm:$0xff]  ;;  %v682_v63 = vld [vmem:[%s2885_s27 + $0x18] sm:$0xff]  ;;  %v3506_v37 = vld [vmem:[%s3688_s1 + $0x10] sm:$0xff]   ;;  %s3568_s27 = smov 18   ;;  %s3873_s19 = sld [smem:[%s4029_s0 + %s3572_s16]]  }
   0xf   :  { %3179 = vmatprep.mubr.msk.bf16.mxu0 %vm179_vm0, %v3496_v5  ;;  %s3789_s30 = sld [smem:[%s4029_s0 + %s3568_s27]]   ;;  %s3576_s2 = smov 11  }
  0x10   :  { %386 = vperm.xlu1 %3493, %v376_v7   ;;  %381 = vperm.xlu0 %3492, %v375_v8   ;;  %s3917_s27 = sld [smem:[%s4029_s0 + %s3574_s24]]  }
  0x14   :  { %391 = vperm.xlu1 %3493, %v377_v9   ;;  %396 = vperm.xlu0 %3492, %v378_v10  }
  0x7a   :  { %v129_v16 = vpop.permute.xlu0 %128  ;;  %v144_v18 = vpop.permute.xlu1 %143 }
  0x7b   :  { %v150_v19 = vsel %vm149_vm1, %v144_v18, 0.0  ;;  %v135_v21 = vsel %vm134_vm2, 0.0, %v129_v16 }
  0x7c   :  { %v156_v23 = vmul.f32 %v3621_v17, %v150_v19  ;;  %v141_v27 = vmul.f32 %v3626_v20, %v135_v21 }
  0x7e   :  { %v131_v22 = vpop.permute.xlu0 %130  ;;  %v146_v24 = vpop.permute.xlu1 %145 }
  0x7f   :  { %v136_v25 = vsel %vm134_vm2, 0.0, %v131_v22  ;;  %v151_v26 = vsel %vm149_vm1, %v146_v24, 0.0 }
  0x80   :  { %v142_v28 = vmul.f32 %v3626_v20, %v136_v25  ;;  %v157_v29 = vmul.f32 %v3621_v17, %v151_v26  ;;  %v3503_v26 = vld [vmem:[%s3644_s23 + $0x8] sm:$0xff]  }
  0x82   :  { %v162_v30 = vpack.c.bf16 %v142_v28, %v141_v27  ;;  %v305_v31 = vpack.c.bf16 %v157_v29, %v156_v23  ;;  %v3504_v28 = vld [vmem:[%s3644_s23 + $0x20] sm:$0xff]  }
  0x84   :  { %3177 = vmatprep.subr.bf16.mxu0 %v162_v30 }
  0x85   :  { %3178 = vmatpush3.bf16.msra.mxu0 %v162_v30 }
  0x86   :  { %3183 = vmatprep.subr.bf16.mxu0 %v305_v31 }
  0x88   :  { %3180 = vmatmul.mubr.msk.bf16.vlgmr.msra.gmra.mrb[0].mxu0 %vm179_vm0, %v3497_v32 }
  0x89   :  { %3184 = vmatpush3.bf16.msra.mxu0 %v305_v31  ;;  %3185 = vmatprep.mubr.msk.bf16.mxu0 %vm179_vm0, %v3498_v33 }
  0x8f   :  { %v387_v35 = vpop.permute.xlu1 %386  ;;  %v382_v36 = vpop.permute.xlu0 %381 }
  0x93   :  { %v392_v38 = vpop.permute.xlu1 %391  ;;  %v397_v40 = vpop.permute.xlu0 %396 }
  0x94   :  { %3186 = vmatmul.mubr.msk.bf16.vlgmr.msra.gmra.mrb[0].mxu0 %vm179_vm0, %v3499_v34 }
  0x95   :  { %3217 = vmatprep.mubr.msk.bf16.mxu0 %vm482_vm3, %v3506_v37 }
 0x167   :  { %v3187_v39 = vpop.f32.mrb[0].mxu0 }
 0x168   :  { %v401_v41 = vadd.f32 %v3187_v39, %v392_v38  ;;  %v356_v42 = vpop.f32.mrb[1].mxu0 }
 0x169   :  { %v399_v43 = vadd.f32 %v382_v36, %v356_v42  ;;  %v3188_v44 = vpop.f32.mrb[2].mxu0 }
 0x16a   :  { %v409_v45 = vmul.f32 0.2, %v401_v41  ;;  %v402_v46 = vadd.f32 %v3188_v44, %v397_v40  ;;  %v359_v47 = vpop.f32.mrb[3].mxu0  ;;  %vm405_vm5 = vcmp.gt.f32.partialorder %v401_v41, 0.0 }
 0x16b   :  { %v407_v48 = vmul.f32 0.2, %v399_v43  ;;  %v400_v49 = vadd.f32 %v387_v35, %v359_v47  ;;  %vm403_vm4 = vcmp.gt.f32.partialorder %v399_v43, 0.0  ;;  %v3505_v35 = vld [vmem:[%s3644_s23 + $0x28] sm:$0xff]   ;;  %s3567_s23 = smov 19  }
 0x16c   :  { %v410_v50 = vmul.f32 0.2, %v402_v46  ;;  %vm406_vm6 = vcmp.gt.f32.partialorder %v402_v46, 0.0  ;;  %v413_v53 = vsel %vm405_vm5, %v401_v41, %v409_v45  ;;  %s3782_s26 = sld [smem:[%s4029_s0 + %s3567_s23]]  }
 0x16d   :  { %v408_v51 = vmul.f32 0.2, %v400_v49  ;;  %v411_v52 = vsel %vm403_vm4, %v399_v43, %v407_v48  ;;  %vm404_vm7 = vcmp.gt.f32.partialorder %v400_v49, 0.0  ;;  %s2879_s23 = sld [smem:[%s4029_s0 + %s3573_s20]]  }
 0x16e   :  { %419 = vrot.lane.b32.xlu1 %v411_v52, %s3554_s3  ;;  %v414_v54 = vsel %vm406_vm6, %v402_v46, %v410_v50 }
 0x16f   :  { %v412_v55 = vsel %vm404_vm7, %v400_v49, %v408_v51  ;;  %v471_v56 = vpack.c.bf16 %v414_v54, %v413_v53 }
 0x170   :  { %421 = vrot.lane.b32.xlu0 %v412_v55, %s3554_s3  ;;  %v470_v57 = vpack.c.bf16 %v412_v55, %v411_v52 }
 0x172   :  { %423 = vrot.lane.b32.xlu1 %v413_v53, %s3554_s3  ;;  %3189 = vmatprep.subr.bf16.mxu1 %v470_v57 }
 0x173   :  { %3190 = vmatpush3.bf16.msra.mxu1 %v470_v57 }
 0x174   :  { %425 = vrot.lane.b32.xlu0 %v414_v54, %s3554_s3  ;;  %3191 = vmatprep.subr.bf16.mxu1 %v471_v56 }
 0x176   :  { %439 = vrot.lane.b32.xlu1 %v411_v52, %s3556_s11 }
 0x177   :  { %3192 = vmatpush3.bf16.msra.mxu1 %v471_v56 }
 0x178   :  { %441 = vrot.lane.b32.xlu0 %v412_v55, %s3556_s11 }
 0x17a   :  { %443 = vrot.lane.b32.xlu1 %v413_v53, %s3556_s11  ;;  %3194 = vmatmul.mubr.msk.bf16.vlgmr.msra.gmra.mrb[0].mxu1 %vm482_vm3, %v3501_v58 }
 0x17b   :  { %3201 = vmatprep.mubr.msk.bf16.mxu1 %vm482_vm3, %v3502_v59  ;;  %v3507_v59 = vld [vmem:[%s3688_s1 + $0x18] sm:$0xff]  }
 0x17c   :  { %445 = vrot.lane.b32.xlu0 %v414_v54, %s3556_s11 }
 0x17e   :  { %685 = vperm.xlu1 %3493, %v679_v60   ;;  %v3508_v60 = vld [vmem:[%s3688_s1] sm:$0xff]  }
 0x180   :  { %690 = vperm.xlu0 %3492, %v680_v61   ;;  %v982_v61 = vld [vmem:[%s2887_s6] sm:$0xff] }
 0x182   :  { %695 = vperm.xlu1 %3493, %v681_v62   ;;  %v983_v62 = vld [vmem:[%s2887_s6 + $0x8] sm:$0xff] }
 0x184   :  { %700 = vperm.xlu0 %3492, %v682_v63   ;;  %v984_v63 = vld [vmem:[%s2887_s6 + $0x10] sm:$0xff] }
 0x1e0   :  { %v420_v0 = vpop.permute.xlu1 %419 }
 0x1e1   :  { %v431_v1 = vsel %vm134_vm2, 0.0, %v420_v0  ;;  %v985_v0 = vld [vmem:[%s2887_s6 + $0x18] sm:$0xff]  ;;  %s3570_s6 = smov 6  }
 0x1e2   :  { %v422_v2 = vpop.permute.xlu0 %421  ;;  %v435_v4 = vmul.f32 %v431_v1, %v3626_v20  ;;  %v1414_v1 = vld [vmem:[%s2890_s10] sm:$0xff]  ;;  %s3815_s9 = sld [smem:[%s4029_s0 + %s3570_s6]]  }
 0x1e3   :  { %v432_v3 = vsel %vm134_vm2, 0.0, %v422_v2  ;;  %v1415_v2 = vld [vmem:[%s2890_s10 + $0x8] sm:$0xff]  ;;  %s2881_s6 = sld [smem:[%s4029_s0 + %s3576_s2]]  }
 0x1e4   :  { %v436_v5 = vmul.f32 %v432_v3, %v3626_v20  ;;  %v424_v6 = vpop.permute.xlu1 %423  ;;  %v1416_v3 = vld [vmem:[%s2890_s10 + $0x10] sm:$0xff] }
 0x1e5   :  { %v433_v7 = vsel %vm134_vm2, 0.0, %v424_v6  ;;  %v3719_v6 = vld [vmem:[%s3713_s14 + $0x8] sm:$0xff] }
 0x1e6   :  { %v463_v8 = vpack.c.bf16 %v436_v5, %v435_v4  ;;  %v426_v9 = vpop.permute.xlu0 %425  ;;  %v437_v11 = vmul.f32 %v433_v7, %v3626_v20  ;;  %v1417_v4 = vld [vmem:[%s2890_s10 + $0x18] sm:$0xff]  ;;  %v3716_v5 = vld [vmem:[%s3713_s14] sm:$0xff]  ;;  %v3724_v7 = vld [vmem:[%s3713_s14 + $0x10] sm:$0xff]  ;;  %s3571_s10 = smov 2  }
 0x1e7   :  { %v434_v10 = vsel %vm134_vm2, 0.0, %v426_v9  ;;  %v1830_v9 = vld [vmem:[%s2877_s18] sm:$0xff]  ;;  %s2872_s15 = sld [smem:[%s4029_s0 + %s3571_s10]]   ;;  %s3578_s10 = smov 24  }
 0x1e8   :  { %v438_v15 = vmul.f32 %v434_v10, %v3626_v20  ;;  %v440_v16 = vpop.permute.xlu1 %439  ;;  %3197 = vmatprep.subr.bf16.mxu1 %v463_v8  ;;  %v1831_v10 = vld [vmem:[%s2877_s18 + $0x8] sm:$0xff] }
 0x1e9   :  { %v451_v18 = vsel %vm149_vm1, %v440_v16, 0.0  ;;  %3198 = vmatpush3.bf16.msra.mxu1 %v463_v8  ;;  %v3729_v8 = vld [vmem:[%s3713_s14 + $0x18] sm:$0xff] }
 0x1ea   :  { %v464_v19 = vpack.c.bf16 %v438_v15, %v437_v11  ;;  %v442_v21 = vpop.permute.xlu0 %441  ;;  %v455_v23 = vmul.f32 %v451_v18, %v3621_v17  ;;  %v1832_v11 = vld [vmem:[%s2877_s18 + $0x10] sm:$0xff]  ;;  %v1833_v15 = vld [vmem:[%s2877_s18 + $0x18] sm:$0xff] }
 0x1eb   :  { %v452_v22 = vsel %vm149_vm1, %v442_v21, 0.0 }
 0x1ec   :  { %v456_v24 = vmul.f32 %v452_v22, %v3621_v17  ;;  %v444_v25 = vpop.permute.xlu1 %443  ;;  %3199 = vmatprep.subr.bf16.mxu1 %v464_v19 }
 0x1ed   :  { %v453_v27 = vsel %vm149_vm1, %v444_v25, 0.0  ;;  %3200 = vmatpush3.bf16.msra.mxu1 %v464_v19 }
 0x1ee   :  { %v608_v29 = vpack.c.bf16 %v456_v24, %v455_v23  ;;  %v446_v30 = vpop.permute.xlu0 %445  ;;  %v457_v32 = vmul.f32 %v453_v27, %v3621_v17 }
 0x1ef   :  { %v454_v31 = vsel %vm149_vm1, %v446_v30, 0.0 }
 0x1f0   :  { %v458_v33 = vmul.f32 %v454_v31, %v3621_v17  ;;  %3202 = vmatmul.mubr.msk.bf16.vlgmr.msra.gmra.mrb[0].mxu1 %vm482_vm3, %v3503_v26  ;;  %3205 = vmatprep.subr.bf16.mxu1 %v608_v29 }
 0x1f1   :  { %3206 = vmatpush3.bf16.msra.mxu1 %v608_v29  ;;  %3209 = vmatprep.mubr.msk.bf16.mxu1 %vm482_vm3, %v3504_v28 }
 0x1f2   :  { %v609_v34 = vpack.c.bf16 %v458_v33, %v457_v32 }
 0x1f4   :  { %3207 = vmatprep.subr.bf16.mxu1 %v609_v34 }
 0x1f5   :  { %3208 = vmatpush3.bf16.msra.mxu1 %v609_v34 }
 0x1fc   :  { %3210 = vmatmul.mubr.msk.bf16.vlgmr.msra.gmra.mrb[0].mxu1 %vm482_vm3, %v3505_v35 }
 0x1fd   :  { %v686_v36 = vpop.permute.xlu1 %685 }
 0x1ff   :  { %v691_v38 = vpop.permute.xlu0 %690 }
 0x201   :  { %v696_v39 = vpop.permute.xlu1 %695 }
 0x203   :  { %v701_v43 = vpop.permute.xlu0 %700 }
 0x2cf   :  { %v3211_v40 = vpop.f32.mrb[0].mxu1 }
 0x2d0   :  { %v705_v41 = vadd.f32 %v3211_v40, %v696_v39  ;;  %v660_v42 = vpop.f32.mrb[1].mxu1  ;;  %v3509_v39 = vld [vmem:[%s3688_s1 + $0x8] sm:$0xff]  }
 0x2d1   :  { %v703_v44 = vadd.f32 %v686_v36, %v660_v42  ;;  %v3212_v45 = vpop.f32.mrb[2].mxu1 }
 0x2d2   :  { %v713_v46 = vmul.f32 0.2, %v705_v41  ;;  %v706_v47 = vadd.f32 %v3212_v45, %v701_v43  ;;  %v663_v48 = vpop.f32.mrb[3].mxu1  ;;  %vm709_vm9 = vcmp.gt.f32.partialorder %v705_v41, 0.0 }
 0x2d3   :  { %v711_v49 = vmul.f32 0.2, %v703_v44  ;;  %v704_v50 = vadd.f32 %v691_v38, %v663_v48  ;;  %vm707_vm8 = vcmp.gt.f32.partialorder %v703_v44, 0.0  ;;  %v1022_v48 = vld [vmem:[%s2874_s22] sm:$0xff] }
 0x2d4   :  { %v714_v51 = vmul.f32 0.2, %v706_v47  ;;  %vm710_vm10 = vcmp.gt.f32.partialorder %v706_v47, 0.0  ;;  %v717_v54 = vsel %vm709_vm9, %v705_v41, %v713_v46 }
 0x2d5   :  { %v712_v52 = vmul.f32 0.2, %v704_v50  ;;  %v715_v53 = vsel %vm707_vm8, %v703_v44, %v711_v49  ;;  %vm708_vm11 = vcmp.gt.f32.partialorder %v704_v50, 0.0  ;;  %v1023_v49 = vld [vmem:[%s2874_s22 + $0x8] sm:$0xff] }
 0x2d6   :  { %723 = vrot.lane.b32.xlu1 %v715_v53, %s3554_s3  ;;  %v718_v55 = vsel %vm710_vm10, %v706_v47, %v714_v51  ;;  %v3511_v47 = vld [vmem:[%s3688_s1 + $0x28] sm:$0xff]   ;;  %v1025_v51 = vld [vmem:[%s2874_s22 + $0x18] sm:$0xff] }
 0x2d7   :  { %v716_v56 = vsel %vm708_vm11, %v704_v50, %v712_v52  ;;  %v775_v57 = vpack.c.bf16 %v718_v55, %v717_v54  ;;  %v1024_v50 = vld [vmem:[%s2874_s22 + $0x10] sm:$0xff] }
 0x2d8   :  { %725 = vrot.lane.b32.xlu0 %v716_v56, %s3554_s3  ;;  %v774_v58 = vpack.c.bf16 %v716_v56, %v715_v53  ;;  %v3397_v52 = vpack.c.bf16 %v1025_v51, %v1024_v50 }
 0x2da   :  { %727 = vrot.lane.b32.xlu1 %v717_v54, %s3554_s3  ;;  %3213 = vmatprep.subr.bf16.mxu0 %v774_v58 }
 0x2db   :  { %3214 = vmatpush3.bf16.msra.mxu0 %v774_v58 }
 0x2dc   :  { %729 = vrot.lane.b32.xlu0 %v718_v55, %s3554_s3  ;;  %3215 = vmatprep.subr.bf16.mxu0 %v775_v57 }
 0x2de   :  { %743 = vrot.lane.b32.xlu1 %v715_v53, %s3556_s11 }
 0x2df   :  { %3216 = vmatpush3.bf16.msra.mxu0 %v775_v57 }
 0x2e0   :  { %745 = vrot.lane.b32.xlu0 %v716_v56, %s3556_s11 }
 0x2e2   :  { %747 = vrot.lane.b32.xlu1 %v717_v54, %s3556_s11  ;;  %3218 = vmatmul.mubr.msk.bf16.vlgmr.msra.gmra.mrb[4].mxu0 %vm482_vm3, %v3507_v59 }
 0x2e3   :  { %3225 = vmatprep.mubr.msk.bf16.mxu0 %vm482_vm3, %v3508_v60 }
 0x2e4   :  { %749 = vrot.lane.b32.xlu0 %v718_v55, %s3556_s11 }
 0x2e6   :  { %988 = vperm.xlu1 %3493, %v982_v61  }
 0x2e8   :  { %993 = vperm.xlu0 %3492, %v983_v62  }
 0x2ea   :  { %998 = vperm.xlu1 %3493, %v984_v63  }
 0x2ec   :  { %1003 = vperm.xlu0 %3492, %v985_v0  }
 0x2ee   :  { %1420 = vperm.xlu1 %3493, %v1414_v1  }
 0x2f0   :  { %1425 = vperm.xlu0 %3492, %v1415_v2  }
 0x2f2   :  { %1430 = vperm.xlu1 %3493, %v1416_v3  }
 0x2f4   :  { %1435 = vperm.xlu0 %3492, %v1417_v4  }
 0x2f6   :  { %1562 = vrot.lane.b32.xlu1 %v3716_v5, %s3554_s3 }
 0x2f8   :  { %1564 = vrot.lane.b32.xlu0 %v3719_v6, %s3554_s3 }
 0x2fa   :  { %1566 = vrot.lane.b32.xlu1 %v3724_v7, %s3554_s3 }
 0x2fc   :  { %1568 = vrot.lane.b32.xlu0 %v3729_v8, %s3554_s3 }
 0x2fe   :  { %1586 = vrot.lane.b32.xlu1 %v3716_v5, %s3556_s11 }
 0x300   :  { %1588 = vrot.lane.b32.xlu0 %v3719_v6, %s3556_s11 }
 0x302   :  { %1590 = vrot.lane.b32.xlu1 %v3724_v7, %s3556_s11 }
 0x304   :  { %1592 = vrot.lane.b32.xlu0 %v3729_v8, %s3556_s11 }
 0x306   :  { %1836 = vperm.xlu1 %3493, %v1830_v9  }
 0x308   :  { %1841 = vperm.xlu0 %3492, %v1831_v10  }
 0x30a   :  { %1846 = vperm.xlu1 %3493, %v1832_v11  }
 0x30c   :  { %1851 = vperm.xlu0 %3492, %v1833_v15  }
 0x348   :  { %v724_v16 = vpop.permute.xlu1 %723 }
 0x349   :  { %v735_v18 = vsel %vm134_vm2, 0.0, %v724_v16 }
 0x34a   :  { %v726_v19 = vpop.permute.xlu0 %725  ;;  %v739_v22 = vmul.f32 %v735_v18, %v3626_v20 }
 0x34b   :  { %v736_v21 = vsel %vm134_vm2, 0.0, %v726_v19 }
 0x34c   :  { %v740_v23 = vmul.f32 %v736_v21, %v3626_v20  ;;  %v728_v24 = vpop.permute.xlu1 %727 }
 0x34d   :  { %v737_v25 = vsel %vm134_vm2, 0.0, %v728_v24 }
 0x34e   :  { %v767_v26 = vpack.c.bf16 %v740_v23, %v739_v22  ;;  %v730_v27 = vpop.permute.xlu0 %729  ;;  %v741_v29 = vmul.f32 %v737_v25, %v3626_v20  ;;  %v3512_v22 = vld [vmem:[%s3782_s26] sm:$0xff]  }
 0x34f   :  { %v738_v28 = vsel %vm134_vm2, 0.0, %v730_v27 }
 0x350   :  { %v742_v30 = vmul.f32 %v738_v28, %v3626_v20  ;;  %v744_v31 = vpop.permute.xlu1 %743  ;;  %3221 = vmatprep.subr.bf16.mxu0 %v767_v26  ;;  %v3510_v20 = vld [vmem:[%s3688_s1 + $0x20] sm:$0xff]   ;;  %s3569_s1 = smov 21  }
 0x351   :  { %v755_v32 = vsel %vm149_vm1, %v744_v31, 0.0  ;;  %3222 = vmatpush3.bf16.msra.mxu0 %v767_v26  ;;  %s3808_s5 = sld [smem:[%s4029_s0 + %s3569_s1]]  }
 0x352   :  { %v768_v33 = vpack.c.bf16 %v742_v30, %v741_v29  ;;  %v746_v34 = vpop.permute.xlu0 %745  ;;  %v759_v36 = vmul.f32 %v755_v32, %v3621_v17  ;;  %s2892_s1 = sld [smem:[%s4029_s0 + %s3575_s28]]  }
 0x353   :  { %v756_v35 = vsel %vm149_vm1, %v746_v34, 0.0 }
 0x354   :  { %v760_v37 = vmul.f32 %v756_v35, %v3621_v17  ;;  %v748_v38 = vpop.permute.xlu1 %747  ;;  %3223 = vmatprep.subr.bf16.mxu0 %v768_v33 }
 0x355   :  { %v757_v40 = vsel %vm149_vm1, %v748_v38, 0.0  ;;  %3224 = vmatpush3.bf16.msra.mxu0 %v768_v33 }
 0x356   :  { %v911_v41 = vpack.c.bf16 %v760_v37, %v759_v36  ;;  %v750_v42 = vpop.permute.xlu0 %749  ;;  %v761_v44 = vmul.f32 %v757_v40, %v3621_v17 }
 0x357   :  { %v758_v43 = vsel %vm149_vm1, %v750_v42, 0.0 }
 0x358   :  { %v762_v45 = vmul.f32 %v758_v43, %v3621_v17  ;;  %3226 = vmatmul.mubr.msk.bf16.vlgmr.msra.gmra.mrb[4].mxu0 %vm482_vm3, %v3509_v39  ;;  %3229 = vmatprep.subr.bf16.mxu0 %v911_v41  ;;  %v3393_v17 = vpack.c.bf16 %v1023_v49, %v1022_v48 }
 0x359   :  { %3230 = vmatpush3.bf16.msra.mxu0 %v911_v41  ;;  %3233 = vmatprep.mubr.msk.bf16.mxu0 %vm482_vm3, %v3510_v20 }
 0x35a   :  { %v912_v46 = vpack.c.bf16 %v762_v45, %v761_v44  ;;  %3394 = vmatprep.subr.bf16.mxu1 %v3393_v17 }
 0x35b   :  { %3396 = vmatpush3.bf16.msra.mxu1 %v3393_v17 }
 0x35c   :  { %3231 = vmatprep.subr.bf16.mxu0 %v912_v46  ;;  %3398 = vmatprep.subr.bf16.mxu1 %v3397_v52 }
 0x35d   :  { %3232 = vmatpush3.bf16.msra.mxu0 %v912_v46 }
 0x35f   :  { %3400 = vmatpush3.bf16.msra.mxu1 %v3397_v52 }
 0x360   :  { %3402 = vmatprep.subr.bf16.mxu1 %v3393_v17 }
 0x364   :  { %3234 = vmatmul.mubr.msk.bf16.vlgmr.msra.gmra.mrb[4].mxu0 %vm482_vm3, %v3511_v47 }
 0x365   :  { %v989_v53 = vpop.permute.xlu1 %988 }
 0x367   :  { %v994_v54 = vpop.permute.xlu0 %993 }
 0x369   :  { %v999_v55 = vpop.permute.xlu1 %998 }
 0x36b   :  { %v1004_v61 = vpop.permute.xlu0 %1003 }
 0x437   :  { %v3235_v56 = vpop.f32.mrb[4].mxu0 }
 0x438   :  { %v1008_v57 = vadd.f32 %v3235_v56, %v999_v55  ;;  %v963_v58 = vpop.f32.mrb[5].mxu0 }
 0x439   :  { %v1006_v59 = vadd.f32 %v989_v53, %v963_v58  ;;  %v3236_v60 = vpop.f32.mrb[6].mxu0 }
 0x43a   :  { %v966_v62 = vpop.f32.mrb[7].mxu0  ;;  %v1009_v0 = vadd.f32 %v3236_v60, %v1004_v61  ;;  %v1016_v2 = vmul.f32 0.2, %v1008_v57  ;;  %vm1012_vm13 = vcmp.gt.f32.partialorder %v1008_v57, 0.0 }
 0x43b   :  { %vm1010_vm12 = vcmp.gt.f32.partialorder %v1006_v59, 0.0  ;;  %v1014_v63 = vmul.f32 0.2, %v1006_v59  ;;  %v1007_v1 = vadd.f32 %v994_v54, %v966_v62 }
 0x43c   :  { %v1017_v9 = vmul.f32 0.2, %v1009_v0  ;;  %vm1013_vm15 = vcmp.gt.f32.partialorder %v1009_v0, 0.0  ;;  %v1020_v11 = vsel %vm1012_vm13, %v1008_v57, %v1016_v2 }
 0x43d   :  { %vm1011_vm14 = vcmp.gt.f32.partialorder %v1007_v1, 0.0  ;;  %v1015_v3 = vmul.f32 0.2, %v1007_v1  ;;  %v1018_v4 = vsel %vm1010_vm12, %v1006_v59, %v1014_v63  ;;  %v1125_v19 = vmul.f32 %v1020_v11, %v1020_v11 }
 0x43e   :  { %3245 = vmatprep.mubr.msk.f32.mxu1 %vm482_vm3, %v1018_v4  ;;  %v1123_v15 = vmul.f32 %v1018_v4, %v1018_v4  ;;  %v1021_v16 = vsel %vm1013_vm15, %v1009_v0, %v1017_v9  ;;  %vm1598_vm15 = vcmask 121856  }
 0x43f   :  { %v1019_v10 = vsel %vm1011_vm14, %v1007_v1, %v1015_v3  ;;  %v1126_v21 = vmul.f32 %v1021_v16, %v1021_v16 }
 0x440   :  { %3246 = vmatmul.mubr.msk.f32.vlgmr.msra.gmra.mrb[4].mxu1 %vm482_vm3, %v1019_v10  ;;  %v1124_v18 = vmul.f32 %v1019_v10, %v1019_v10 }
 0x441   :  { %3248 = vmatprep.mubr.msk.f32.mxu1 %vm482_vm3, %v1020_v11  ;;  %3404 = vmatpush3.bf16.msra.mxu1 %v3393_v17 }
 0x442   :  { %3406 = vmatprep.subr.bf16.mxu1 %v3397_v52 }
 0x444   :  { %3249 = vmatmul.mubr.msk.f32.gmra.mrb[6].mxu1 %vm482_vm3, %v1021_v16  ;;  %v3513_v16 = vld [vmem:[%s3782_s26 + $0x8] sm:$0xff]  }
 0x445   :  { %3408 = vmatpush3.bf16.msra.mxu1 %v3397_v52  ;;  %3259 = vmatprep.mubr.msk.f32.mxu1 %vm482_vm3, %v1123_v15 }
 0x448   :  { %3260 = vmatmul.mubr.msk.f32.vlgmr.msra.gmra.mrb[8].mxu1 %vm482_vm3, %v1124_v18  ;;  %v3514_v18 = vld [vmem:[%s3789_s30] sm:$0xff]  }
 0x449   :  { %3262 = vmatprep.mubr.msk.f32.mxu1 %vm482_vm3, %v1125_v19  ;;  %v3515_v19 = vld [vmem:[%s3789_s30 + $0x8] sm:$0xff]  }
 0x44c   :  { %3263 = vmatmul.mubr.msk.f32.gmra.mrb[10].mxu1 %vm482_vm3, %v1126_v21  ;;  %v3516_v21 = vld [vmem:[%s3808_s5] sm:$0xff]  }
 0x44d   :  { %3269 = vmatprep.mubr.msk.bf16.mxu1 %vm482_vm3, %v3512_v22  ;;  %3285 = vmatprep.mubr.msk.bf16.mxu0 %vm482_vm3, %v3516_v21  ;;  %v1421_v22 = vpop.permute.xlu1 %1420 }
 0x513   :  { %v3247_v23 = vpop.f32.mrb[4].mxu1 }
 0x514   :  { %v1225_v24 = vmul.f32 0.0625, %v3247_v23  ;;  %v1104_v25 = vpop.f32.mrb[5].mxu1 }
 0x515   :  { %v1224_v26 = vmul.f32 0.0625, %v1104_v25 }
 0x516   :  { %v1229_v32 = vmul.f32 %v3247_v23, %v1225_v24  ;;  %v1426_v23 = vpop.permute.xlu0 %1425 }
 0x517   :  { %v3791_v27 = vpack.c.bf16 %v1225_v24, %v1224_v26  ;;  %v3250_v28 = vpop.f32.mrb[6].mxu1  ;;  %v1228_v33 = vmul.f32 %v1224_v26, %v1104_v25  ;;  %v1431_v24 = vpop.permute.xlu1 %1430 }
 0x518   :  { %v1227_v29 = vmul.f32 0.0625, %v3250_v28  ;;  %v1114_v30 = vpop.f32.mrb[7].mxu1 }
 0x519   :  { %v1226_v31 = vmul.f32 0.0625, %v1114_v30 }
 0x51a   :  { %v1231_v39 = vmul.f32 %v3250_v28, %v1227_v29  ;;  %v1436_v28 = vpop.permute.xlu0 %1435 }
 0x51b   :  { %v3793_v34 = vpack.c.bf16 %v1227_v29, %v1226_v31  ;;  %v3261_v35 = vpop.f32.mrb[8].mxu1  ;;  %v1230_v20 = vmul.f32 %v1226_v31, %v1114_v30 }
 0x51c   :  { %v1233_v36 = vsub.f32 %v3261_v35, %v1229_v32  ;;  %v1205_v37 = vpop.f32.mrb[9].mxu1 }
 0x51d   :  { %v1232_v38 = vsub.f32 %v1205_v37, %v1228_v33 }
 0x51e   :  { %v1237_v40 = vmax.f32 %v1233_v36, 0.0 }
 0x51f   :  { %v1236_v41 = vmax.f32 %v1232_v38, 0.0  ;;  %v3264_v42 = vpop.f32.mrb[10].mxu1 }
 0x520   :  { %v1241_v43 = vmul.f32 0.06666667, %v1237_v40  ;;  %v1235_v44 = vsub.f32 %v3264_v42, %v1231_v39  ;;  %v1215_v45 = vpop.f32.mrb[11].mxu1  ;;  %v1563_v42 = vpop.permute.xlu1 %1562 }
 0x521   :  { %v1240_v46 = vmul.f32 0.06666667, %v1236_v41  ;;  %v1234_v47 = vsub.f32 %v1215_v45, %v1230_v20  ;;  %v122_v45 = vld [vmem:[%s2872_s15] sm:$0x3]  ;;  %s3945_s15 = sld [smem:[%s4029_s0 + %s3578_s10]]  }
 0x522   :  { %3542 = vrsqrt.f32 %v1241_v43  ;;  %v1239_v48 = vmax.f32 %v1235_v44, 0.0  ;;  %vm1253_vm1 = vcmp.eq.f32.partialorder %v1241_v43, inf  ;;  %v1256_v55 = vand.u32 2147483648, %v1241_v43 }
 0x523   :  { %3544 = vrsqrt.f32 %v1240_v46  ;;  %v1238_v49 = vmax.f32 %v1234_v47, 0.0  ;;  %vm1246_vm4 = vcmp.eq.f32.partialorder %v1240_v46, inf  ;;  %v1249_v56 = vand.u32 2147483648, %v1240_v46 }
 0x524   :  { %v1243_v17 = vmul.f32 0.06666667, %v1239_v48  ;;  %vm1255_vm5 = vcmp.eq.f32.partialorder %v1241_v43, 0.0  ;;  %vm1248_vm6 = vcmp.eq.f32.partialorder %v1240_v46, 0.0  ;;  %v1622_v47 = vpack.c.bf16 %v3719_v6, %v3716_v5 }
 0x525   :  { %v1242_v50 = vmul.f32 0.06666667, %v1238_v49  ;;  %v1574_v48 = vsel %vm134_vm2, 0.0, %v1563_v42 }
 0x526   :  { %3546 = vrsqrt.f32 %v1243_v17  ;;  %vm1267_vm7 = vcmp.eq.f32.partialorder %v1243_v17, inf  ;;  %v1270_v2 = vand.u32 2147483648, %v1243_v17  ;;  %vm1269_vm9 = vcmp.eq.f32.partialorder %v1243_v17, 0.0 }
 0x527   :  { %3548 = vrsqrt.f32 %v1242_v50  ;;  %vm1260_vm8 = vcmp.eq.f32.partialorder %v1242_v50, inf  ;;  %v1263_v3 = vand.u32 2147483648, %v1242_v50  ;;  %vm1262_vm10 = vcmp.eq.f32.partialorder %v1242_v50, 0.0 }
 0x52c   :  { %v3543_v51 = vpop.eup %3542 }
 0x52d   :  { %v3545_v52 = vpop.eup %3544  ;;  %v1252_v53 = vmul.f32 %v3543_v51, %v1241_v43  ;;  %v3517_v51 = vld [vmem:[%s3808_s5 + $0x8] sm:$0xff]  }
 0x52e   :  { %v1245_v54 = vmul.f32 %v3545_v52, %v1240_v46  ;;  %v3518_v52 = vld [vmem:[%s3815_s9 + $0x10] sm:$0xff]  }
 0x52f   :  { %v1254_v57 = vsel %vm1253_vm1, %v1241_v43, %v1252_v53  ;;  %v1565_v43 = vpop.permute.xlu0 %1564 }
 0x530   :  { %v3547_v58 = vpop.eup %3546  ;;  %v1247_v59 = vsel %vm1246_vm4, %v1240_v46, %v1245_v54  ;;  %v1257_v60 = vsel %vm1255_vm5, %v1256_v55, %v1254_v57  ;;  %v3822_v46 = vrot.slane %v122_v45, %v139_v14  ;;  %v1575_v49 = vsel %vm134_vm2, 0.0, %v1565_v43 }
 0x531   :  { %v3549_v61 = vpop.eup %3548  ;;  %v1250_v62 = vsel %vm1248_vm6, %v1249_v56, %v1247_v59  ;;  %v1266_v63 = vmul.f32 %v3547_v58, %v1243_v17  ;;  %v1623_v14 = vpack.c.bf16 %v3729_v8, %v3724_v7  ;;  %v3840_v55 = vrot.slane %v122_v45, %v154_v13 }
 0x532   :  { %v1282_v0 = vpack.c.bf16 %v1257_v60, %v1250_v62  ;;  %v1259_v1 = vmul.f32 %v3549_v61, %v1242_v50  ;;  %v1582_v53 = vmul.f32 %v3822_v46, %v1574_v48  ;;  %v1583_v54 = vmul.f32 %v3822_v46, %v1575_v49  ;;  %v3519_v61 = vld [vmem:[%s3815_s9 + $0x18] sm:$0xff]   ;;  %v3520_v62 = vld [vmem:[%s3815_s9] sm:$0xff]  }
 0x533   :  { %v1268_v4 = vsel %vm1267_vm7, %v1243_v17, %v1266_v63  ;;  %v1567_v17 = vpop.permute.xlu1 %1566  ;;  %v3526_v48 = vld [vmem:[%s3873_s19] sm:$0xff]  }
 0x534   :  { %3265 = vmatprep.subr.bf16.mxu1 %v1282_v0  ;;  %v1261_v9 = vsel %vm1260_vm8, %v1242_v50, %v1259_v1  ;;  %v1271_v10 = vsel %vm1269_vm9, %v1270_v2, %v1268_v4  ;;  %v1569_v50 = vpop.permute.xlu0 %1568  ;;  %v1576_v5 = vsel %vm134_vm2, 0.0, %v1567_v17  ;;  %v1615_v56 = vpack.c.bf16 %v1583_v54, %v1582_v53  ;;  %v2133_v49 = vld [vmem:[%s2879_s23] sm:$0xff]  ;;  %v2134_v17 = vld [vmem:[%s2879_s23 + $0x8] sm:$0xff] }
 0x535   :  { %3266 = vmatpush3.bf16.msra.mxu1 %v1282_v0  ;;  %v1264_v11 = vsel %vm1262_vm10, %v1263_v3, %v1261_v9  ;;  %v1577_v6 = vsel %vm134_vm2, 0.0, %v1569_v50  ;;  %v1584_v57 = vmul.f32 %v3822_v46, %v1576_v5  ;;  %v2135_v50 = vld [vmem:[%s2879_s23 + $0x10] sm:$0xff] }
 0x536   :  { %v1283_v15 = vpack.c.bf16 %v1271_v10, %v1264_v11  ;;  %v1585_v7 = vmul.f32 %v3822_v46, %v1577_v6  ;;  %v3521_v11 = vld [vmem:[%s3815_s9 + $0x8] sm:$0xff]  }
 0x537   :  { %v1587_v8 = vpop.permute.xlu1 %1586 }
 0x538   :  { %3267 = vmatprep.subr.bf16.mxu1 %v1283_v15  ;;  %v1589_v58 = vpop.permute.xlu0 %1588  ;;  %v1599_v59 = vsel %vm1598_vm15, %v1587_v8, 0.0  ;;  %v1616_v63 = vpack.c.bf16 %v1585_v7, %v1584_v57 }
 0x539   :  { %3268 = vmatpush3.bf16.msra.mxu1 %v1283_v15  ;;  %v1600_v60 = vsel %vm1598_vm15, %v1589_v58, 0.0  ;;  %v1607_v12 = vmul.f32 %v3840_v55, %v1599_v59  ;;  %v3522_v15 = vld [vmem:[%s3815_s9 + $0x20] sm:$0xff]  }
 0x53a   :  { %3273 = vmatprep.subr.bf16.mxu1 %v3791_v27  ;;  %v1608_v13 = vmul.f32 %v3840_v55, %v1600_v60 }
 0x53b   :  { %v1591_v1 = vpop.permute.xlu1 %1590 }
 0x53c   :  { %3270 = vmatmul.mubr.msk.bf16.vlgmr.msra.gmra.mrb[12].mxu1 %vm482_vm3, %v3513_v16  ;;  %v1759_v0 = vpack.c.bf16 %v1608_v13, %v1607_v12  ;;  %v1593_v2 = vpop.permute.xlu0 %1592  ;;  %v1601_v3 = vsel %vm1598_vm15, %v1591_v1, 0.0 }
 0x53d   :  { %3274 = vmatpush3.bf16.msra.mxu1 %v3791_v27  ;;  %3277 = vmatprep.mubr.msk.bf16.mxu1 %vm482_vm3, %v3514_v18  ;;  %v1602_v4 = vsel %vm1598_vm15, %v1593_v2, 0.0  ;;  %v1609_v9 = vmul.f32 %v3840_v55, %v1601_v3  ;;  %v3523_v18 = vld [vmem:[%s3815_s9 + $0x28] sm:$0xff]  }
 0x53e   :  { %3275 = vmatprep.subr.bf16.mxu1 %v3793_v34  ;;  %v1610_v10 = vmul.f32 %v3840_v55, %v1602_v4  ;;  %v3527_v3 = vld [vmem:[%s3873_s19 + $0x8] sm:$0xff]  }
 0x540   :  { %v1760_v16 = vpack.c.bf16 %v1610_v10, %v1609_v9  ;;  %v3528_v9 = vld [vmem:[%s3873_s19 + $0x20] sm:$0xff]  }
 0x541   :  { %3276 = vmatpush3.bf16.msra.mxu1 %v3793_v34 }
 0x548   :  { %3278 = vmatmul.mubr.msk.bf16.vlgmr.msra.gmra.mrb[12].mxu1 %vm482_vm3, %v3515_v19 }
 0x61b   :  { %v3279_v25 = vpop.f32.mrb[12].mxu1 }
 0x61c   :  { %v1440_v26 = vadd.f32 %v3279_v25, %v1431_v24  ;;  %v1399_v27 = vpop.f32.mrb[13].mxu1  ;;  %v1837_v24 = vpop.permute.xlu1 %1836 }
 0x61d   :  { %v1438_v29 = vadd.f32 %v1421_v22, %v1399_v27  ;;  %v3280_v30 = vpop.f32.mrb[14].mxu1  ;;  %v1842_v25 = vpop.permute.xlu0 %1841 }
 0x61e   :  { %v1448_v31 = vmul.f32 0.2, %v1440_v26  ;;  %v1441_v32 = vadd.f32 %v3280_v30, %v1436_v28  ;;  %v1402_v33 = vpop.f32.mrb[15].mxu1  ;;  %vm1444_vm11 = vcmp.gt.f32.partialorder %v1440_v26, 0.0 }
 0x61f   :  { %v1446_v34 = vmul.f32 0.2, %v1438_v29  ;;  %v1439_v35 = vadd.f32 %v1426_v23, %v1402_v33  ;;  %vm1442_vm12 = vcmp.gt.f32.partialorder %v1438_v29, 0.0 }
 0x620   :  { %vm1445_vm13 = vcmp.gt.f32.partialorder %v1441_v32, 0.0  ;;  %v1449_v36 = vmul.f32 0.2, %v1441_v32  ;;  %v1452_v38 = vsel %vm1444_vm11, %v1440_v26, %v1448_v31  ;;  %v3524_v26 = vld [vmem:[%s3873_s19 + $0x10] sm:$0xff]   ;;  %v1847_v27 = vpop.permute.xlu1 %1846  ;;  %vm2564_vm11 = vcmask 1041408  }
 0x621   :  { %vm1443_vm14 = vcmp.gt.f32.partialorder %v1439_v35, 0.0  ;;  %v1447_v37 = vmul.f32 0.2, %v1439_v35  ;;  %v1450_v40 = vsel %vm1442_vm12, %v1438_v29, %v1446_v34  ;;  %3317 = vmatprep.mubr.msk.bf16.mxu1 %vm482_vm3, %v3524_v26  ;;  %v1852_v31 = vpop.permute.xlu0 %1851 }
 0x622   :  { %v1453_v39 = vsel %vm1445_vm13, %v1441_v32, %v1449_v36 }
 0x623   :  { %v1451_v20 = vsel %vm1443_vm14, %v1439_v35, %v1447_v37  ;;  %v1459_v41 = vpack.c.bf16 %v1453_v39, %v1452_v38 }
 0x624   :  { %v1458_v44 = vpack.c.bf16 %v1451_v20, %v1450_v40 }
 0x626   :  { %3281 = vmatprep.subr.bf16.mxu0 %v1458_v44 }
 0x627   :  { %3282 = vmatpush3.bf16.msra.mxu0 %v1458_v44 }
 0x628   :  { %3283 = vmatprep.subr.bf16.mxu0 %v1459_v41 }
 0x62b   :  { %3284 = vmatpush3.bf16.msra.mxu0 %v1459_v41 }
 0x62c   :  { %3289 = vmatprep.subr.bf16.mxu0 %v1622_v47 }
 0x62e   :  { %3286 = vmatmul.mubr.msk.bf16.vlgmr.msra.gmra.mrb[8].mxu0 %vm482_vm3, %v3517_v51  ;;  %v2136_v51 = vld [vmem:[%s2879_s23 + $0x18] sm:$0xff]  ;;  %s3581_s23 = smov 5  }
 0x62f   :  { %3290 = vmatpush3.bf16.msra.mxu0 %v1622_v47  ;;  %3293 = vmatprep.mubr.msk.bf16.mxu0 %vm482_vm3, %v3518_v52  ;;  %v3525_v47 = vld [vmem:[%s3873_s19 + $0x18] sm:$0xff]   ;;  %s2875_s26 = sld [smem:[%s4029_s0 + %s3581_s23]]  }
 0x630   :  { %3291 = vmatprep.subr.bf16.mxu0 %v1623_v14 }
 0x633   :  { %3292 = vmatpush3.bf16.msra.mxu0 %v1623_v14 }
 0x634   :  { %3297 = vmatprep.subr.bf16.mxu0 %v1615_v56 }
 0x636   :  { %3294 = vmatmul.mubr.msk.bf16.vlgmr.msra.gmra.mrb[12].mxu0 %vm482_vm3, %v3519_v61 }
 0x637   :  { %3298 = vmatpush3.bf16.msra.mxu0 %v1615_v56  ;;  %3301 = vmatprep.mubr.msk.bf16.mxu0 %vm482_vm3, %v3520_v62 }
 0x638   :  { %3299 = vmatprep.subr.bf16.mxu0 %v1616_v63 }
 0x63b   :  { %3300 = vmatpush3.bf16.msra.mxu0 %v1616_v63 }
 0x63c   :  { %3305 = vmatprep.subr.bf16.mxu0 %v1759_v0 }
 0x642   :  { %3302 = vmatmul.mubr.msk.bf16.vlgmr.msra.gmra.mrb[12].mxu0 %vm482_vm3, %v3521_v11 }
 0x643   :  { %3306 = vmatpush3.bf16.msra.mxu0 %v1759_v0  ;;  %3309 = vmatprep.mubr.msk.bf16.mxu0 %vm482_vm3, %v3522_v15 }
 0x644   :  { %3307 = vmatprep.subr.bf16.mxu0 %v1760_v16 }
 0x647   :  { %3308 = vmatpush3.bf16.msra.mxu0 %v1760_v16 }
 0x64e   :  { %3310 = vmatmul.mubr.msk.bf16.vlgmr.msra.gmra.mrb[12].mxu0 %vm482_vm3, %v3523_v18 }
 0x701   :  { %v3862_v19 = vpop.f32.mrb[8].mxu0 }
 0x702   :  { %v3864_v21 = vpop.f32.mrb[9].mxu0 }
 0x703   :  { %v3866_v22 = vpop.f32.mrb[10].mxu0 }
 0x704   :  { %v3868_v23 = vpop.f32.mrb[11].mxu0 }
 0x721   :  { %v3311_v28 = vpop.f32.mrb[12].mxu0 }
 0x722   :  { %v1856_v29 = vadd.f32 %v3311_v28, %v1847_v27  ;;  %v1811_v30 = vpop.f32.mrb[13].mxu0 }
 0x723   :  { %v1854_v32 = vadd.f32 %v1837_v24, %v1811_v30  ;;  %v3312_v33 = vpop.f32.mrb[14].mxu0 }
 0x724   :  { %v1864_v34 = vmul.f32 0.2, %v1856_v29  ;;  %v1857_v35 = vadd.f32 %v3312_v33, %v1852_v31  ;;  %v1814_v36 = vpop.f32.mrb[15].mxu0  ;;  %vm1860_vm4 = vcmp.gt.f32.partialorder %v1856_v29, 0.0 }
 0x725   :  { %v1862_v37 = vmul.f32 0.2, %v1854_v32  ;;  %v1855_v38 = vadd.f32 %v1842_v25, %v1814_v36  ;;  %vm1858_vm1 = vcmp.gt.f32.partialorder %v1854_v32, 0.0  ;;  %v3529_v25 = vld [vmem:[%s3873_s19 + $0x28] sm:$0xff]   ;;  %s3580_s19 = smov 29  }
 0x726   :  { %v1865_v39 = vmul.f32 0.2, %v1857_v35  ;;  %vm1861_vm5 = vcmp.gt.f32.partialorder %v1857_v35, 0.0  ;;  %v1868_v41 = vsel %vm1860_vm4, %v1856_v29, %v1864_v34  ;;  %s3967_s22 = sld [smem:[%s4029_s0 + %s3580_s19]]  }
 0x727   :  { %v1863_v40 = vmul.f32 0.2, %v1855_v38  ;;  %v1866_v20 = vsel %vm1858_vm1, %v1854_v32, %v1862_v37  ;;  %vm1859_vm6 = vcmp.gt.f32.partialorder %v1855_v38, 0.0  ;;  %v3530_v32 = vld [vmem:[%s3917_s27 + $0x10] sm:$0xff]  }
 0x728   :  { %1874 = vrot.lane.b32.xlu1 %v1866_v20, %s3554_s3  ;;  %v1869_v42 = vsel %vm1861_vm5, %v1857_v35, %v1865_v39  ;;  %3341 = vmatprep.mubr.msk.bf16.mxu0 %vm482_vm3, %v3530_v32 }
 0x729   :  { %v1867_v43 = vsel %vm1859_vm6, %v1855_v38, %v1863_v40  ;;  %v1926_v44 = vpack.c.bf16 %v1869_v42, %v1868_v41 }
 0x72a   :  { %1876 = vrot.lane.b32.xlu0 %v1867_v43, %s3554_s3  ;;  %v1925_v45 = vpack.c.bf16 %v1867_v43, %v1866_v20 }
 0x72c   :  { %1878 = vrot.lane.b32.xlu1 %v1868_v41, %s3554_s3  ;;  %3313 = vmatprep.subr.bf16.mxu1 %v1925_v45 }
 0x72d   :  { %3314 = vmatpush3.bf16.msra.mxu1 %v1925_v45 }
 0x72e   :  { %1880 = vrot.lane.b32.xlu0 %v1869_v42, %s3554_s3  ;;  %3315 = vmatprep.subr.bf16.mxu1 %v1926_v44 }
 0x730   :  { %1894 = vrot.lane.b32.xlu1 %v1866_v20, %s3556_s11 }
 0x731   :  { %3316 = vmatpush3.bf16.msra.mxu1 %v1926_v44 }
 0x732   :  { %1896 = vrot.lane.b32.xlu0 %v1867_v43, %s3556_s11 }
 0x734   :  { %1898 = vrot.lane.b32.xlu1 %v1868_v41, %s3556_s11  ;;  %3318 = vmatmul.mubr.msk.bf16.vlgmr.msra.gmra.mrb[16].mxu1 %vm482_vm3, %v3525_v47 }
 0x735   :  { %3325 = vmatprep.mubr.msk.bf16.mxu1 %vm482_vm3, %v3526_v48 }
 0x736   :  { %1900 = vrot.lane.b32.xlu0 %v1869_v42, %s3556_s11 }
 0x738   :  { %2139 = vperm.xlu1 %3493, %v2133_v49   ;;  %v1461_v49 = vld [vmem:[%s2892_s1 + $0x8] sm:$0xff] }
 0x73a   :  { %2144 = vperm.xlu0 %3492, %v2134_v17   ;;  %v3531_v17 = vld [vmem:[%s3917_s27 + $0x18] sm:$0xff]  }
 0x73c   :  { %2149 = vperm.xlu1 %3493, %v2135_v50   ;;  %v1460_v50 = vld [vmem:[%s2892_s1] sm:$0xff] }
 0x73e   :  { %2154 = vperm.xlu0 %3492, %v2136_v51   ;;  %v3532_v51 = vld [vmem:[%s3917_s27] sm:$0xff]  }
 0x79a   :  { %v1875_v52 = vpop.permute.xlu1 %1874 }
 0x79b   :  { %v1886_v53 = vsel %vm134_vm2, 0.0, %v1875_v52  ;;  %v1462_v52 = vld [vmem:[%s2892_s1 + $0x10] sm:$0xff] }
 0x79c   :  { %v1877_v54 = vpop.permute.xlu0 %1876  ;;  %v1890_v5 = vmul.f32 %v1886_v53, %v3822_v46  ;;  %v1463_v53 = vld [vmem:[%s2892_s1 + $0x18] sm:$0xff]  ;;  %s3583_s1 = smov 26  }
 0x79d   :  { %v1887_v14 = vsel %vm134_vm2, 0.0, %v1877_v54  ;;  %v2436_v54 = vld [vmem:[%s2881_s6] sm:$0xff]  ;;  %s4016_s5 = sld [smem:[%s4029_s0 + %s3583_s1]]  }
 0x79e   :  { %v1891_v6 = vmul.f32 %v1887_v14, %v3822_v46  ;;  %v1879_v56 = vpop.permute.xlu1 %1878  ;;  %v2437_v14 = vld [vmem:[%s2881_s6 + $0x8] sm:$0xff] }
 0x79f   :  { %v1888_v57 = vsel %vm134_vm2, 0.0, %v1879_v56 }
 0x7a0   :  { %v1918_v7 = vpack.c.bf16 %v1891_v6, %v1890_v5  ;;  %v1881_v8 = vpop.permute.xlu0 %1880  ;;  %v1892_v59 = vmul.f32 %v1888_v57, %v3822_v46  ;;  %v2438_v5 = vld [vmem:[%s2881_s6 + $0x10] sm:$0xff]  ;;  %v2439_v6 = vld [vmem:[%s2881_s6 + $0x18] sm:$0xff]  ;;  %v3536_v57 = vld [vmem:[%s3945_s15] sm:$0xff]  }
 0x7a1   :  { %v1889_v58 = vsel %vm134_vm2, 0.0, %v1881_v8 }
 0x7a2   :  { %v1893_v60 = vmul.f32 %v1889_v58, %v3822_v46  ;;  %v1895_v61 = vpop.permute.xlu1 %1894  ;;  %3321 = vmatprep.subr.bf16.mxu1 %v1918_v7 }
 0x7a3   :  { %v1906_v62 = vsel %vm1598_vm15, %v1895_v61, 0.0  ;;  %3322 = vmatpush3.bf16.msra.mxu1 %v1918_v7 }
 0x7a4   :  { %v1919_v63 = vpack.c.bf16 %v1893_v60, %v1892_v59  ;;  %v1897_v12 = vpop.permute.xlu0 %1896  ;;  %v1910_v0 = vmul.f32 %v1906_v62, %v3840_v55 }
 0x7a5   :  { %v1907_v13 = vsel %vm1598_vm15, %v1897_v12, 0.0 }
 0x7a6   :  { %v1911_v1 = vmul.f32 %v1907_v13, %v3840_v55  ;;  %v1899_v2 = vpop.permute.xlu1 %1898  ;;  %3323 = vmatprep.subr.bf16.mxu1 %v1919_v63 }
 0x7a7   :  { %v1908_v4 = vsel %vm1598_vm15, %v1899_v2, 0.0  ;;  %3324 = vmatpush3.bf16.msra.mxu1 %v1919_v63 }
 0x7a8   :  { %v2062_v10 = vpack.c.bf16 %v1911_v1, %v1910_v0  ;;  %v1901_v11 = vpop.permute.xlu0 %1900  ;;  %v1912_v16 = vmul.f32 %v1908_v4, %v3840_v55 }
 0x7a9   :  { %v1909_v15 = vsel %vm1598_vm15, %v1901_v11, 0.0 }
 0x7aa   :  { %v1913_v18 = vmul.f32 %v1909_v15, %v3840_v55  ;;  %3326 = vmatmul.mubr.msk.bf16.vlgmr.msra.gmra.mrb[16].mxu1 %vm482_vm3, %v3527_v3  ;;  %3329 = vmatprep.subr.bf16.mxu1 %v2062_v10 }
 0x7ab   :  { %3330 = vmatpush3.bf16.msra.mxu1 %v2062_v10  ;;  %3333 = vmatprep.mubr.msk.bf16.mxu1 %vm482_vm3, %v3528_v9 }
 0x7ac   :  { %v2063_v24 = vpack.c.bf16 %v1913_v18, %v1912_v16 }
 0x7ae   :  { %3331 = vmatprep.subr.bf16.mxu1 %v2063_v24 }
 0x7af   :  { %3332 = vmatpush3.bf16.msra.mxu1 %v2063_v24  ;;  %v3533_v24 = vld [vmem:[%s3917_s27 + $0x8] sm:$0xff]  }
 0x7b6   :  { %3334 = vmatmul.mubr.msk.bf16.vlgmr.msra.gmra.mrb[16].mxu1 %vm482_vm3, %v3529_v25  ;;  %v3534_v25 = vld [vmem:[%s3917_s27 + $0x20] sm:$0xff]  }
 0x7b7   :  { %v2140_v26 = vpop.permute.xlu1 %2139  ;;  %3365 = vmatprep.mubr.msk.bf16.mxu1 %vm482_vm3, %v3536_v57 }
 0x7b9   :  { %v2145_v27 = vpop.permute.xlu0 %2144 }
 0x7bb   :  { %v2150_v28 = vpop.permute.xlu1 %2149 }
 0x7bd   :  { %v2155_v33 = vpop.permute.xlu0 %2154 }
 0x889   :  { %v3335_v29 = vpop.f32.mrb[16].mxu1 }
 0x88a   :  { %v2159_v30 = vadd.f32 %v3335_v29, %v2150_v28  ;;  %v2114_v31 = vpop.f32.mrb[17].mxu1 }
 0x88b   :  { %v2157_v34 = vadd.f32 %v2140_v26, %v2114_v31  ;;  %v3336_v35 = vpop.f32.mrb[18].mxu1 }
 0x88c   :  { %v2167_v36 = vmul.f32 0.2, %v2159_v30  ;;  %v2160_v37 = vadd.f32 %v3336_v35, %v2155_v33  ;;  %v2117_v38 = vpop.f32.mrb[19].mxu1  ;;  %vm2163_vm8 = vcmp.gt.f32.partialorder %v2159_v30, 0.0 }
 0x88d   :  { %v2165_v39 = vmul.f32 0.2, %v2157_v34  ;;  %v2158_v40 = vadd.f32 %v2145_v27, %v2117_v38  ;;  %vm2161_vm7 = vcmp.gt.f32.partialorder %v2157_v34, 0.0 }
 0x88e   :  { %v2168_v20 = vmul.f32 0.2, %v2160_v37  ;;  %vm2164_vm9 = vcmp.gt.f32.partialorder %v2160_v37, 0.0  ;;  %v2171_v43 = vsel %vm2163_vm8, %v2159_v30, %v2167_v36 }
 0x88f   :  { %v2166_v41 = vmul.f32 0.2, %v2158_v40  ;;  %v2169_v42 = vsel %vm2161_vm7, %v2157_v34, %v2165_v39  ;;  %vm2162_vm10 = vcmp.gt.f32.partialorder %v2158_v40, 0.0 }
 0x890   :  { %2177 = vrot.lane.b32.xlu1 %v2169_v42, %s3554_s3  ;;  %v2172_v44 = vsel %vm2164_vm9, %v2160_v37, %v2168_v20 }
 0x891   :  { %v2170_v45 = vsel %vm2162_vm10, %v2158_v40, %v2166_v41  ;;  %v2229_v47 = vpack.c.bf16 %v2172_v44, %v2171_v43 }
 0x892   :  { %2179 = vrot.lane.b32.xlu0 %v2170_v45, %s3554_s3  ;;  %v2228_v48 = vpack.c.bf16 %v2170_v45, %v2169_v42 }
 0x894   :  { %2181 = vrot.lane.b32.xlu1 %v2171_v43, %s3554_s3  ;;  %3337 = vmatprep.subr.bf16.mxu0 %v2228_v48 }
 0x895   :  { %3338 = vmatpush3.bf16.msra.mxu0 %v2228_v48  ;;  %v3537_v48 = vld [vmem:[%s3945_s15 + $0x8] sm:$0xff]  }
 0x896   :  { %2183 = vrot.lane.b32.xlu0 %v2172_v44, %s3554_s3  ;;  %3339 = vmatprep.subr.bf16.mxu0 %v2229_v47  ;;  %s3577_s3 = smov 25  }
 0x897   :  { %s2895_s9 = sld [smem:[%s4029_s0 + %s3577_s3]]  }
 0x898   :  { %2197 = vrot.lane.b32.xlu1 %v2169_v42, %s3556_s11 }
 0x899   :  { %3340 = vmatpush3.bf16.msra.mxu0 %v2229_v47 }
 0x89a   :  { %1471 = vperm.xlu0 %3492, %v1461_v49  }
 0x89c   :  { %1466 = vperm.xlu1 %3493, %v1460_v50   ;;  %3342 = vmatmul.mubr.msk.bf16.vlgmr.msra.gmra.mrb[16].mxu0 %vm482_vm3, %v3531_v17 }
 0x89d   :  { %3349 = vmatprep.mubr.msk.bf16.mxu0 %vm482_vm3, %v3532_v51  ;;  %v2724_v56 = vld [vmem:[%s2895_s9] sm:$0xff]  ;;  %v2725_v7 = vld [vmem:[%s2895_s9 + $0x8] sm:$0xff]  ;;  %v2726_v8 = vld [vmem:[%s2895_s9 + $0x10] sm:$0xff] }
 0x89e   :  { %2199 = vrot.lane.b32.xlu0 %v2170_v45, %s3556_s11  ;;  %v2727_v58 = vld [vmem:[%s2895_s9 + $0x18] sm:$0xff]  ;;  %v3535_v45 = vld [vmem:[%s3917_s27 + $0x28] sm:$0xff]   ;;  %s3582_s27 = smov 23  }
 0x89f   :  { %s3999_s30 = sld [smem:[%s4029_s0 + %s3582_s27]]  }
 0x8a0   :  { %2201 = vrot.lane.b32.xlu1 %v2171_v43, %s3556_s11 }
 0x8a2   :  { %2203 = vrot.lane.b32.xlu0 %v2172_v44, %s3556_s11  ;;  %s3579_s11 = smov 27  }
 0x8a3   :  { %s2897_s18 = sld [smem:[%s4029_s0 + %s3579_s11]]  }
 0x8a4   :  { %1476 = vperm.xlu1 %3493, %v1462_v52  }
 0x8a6   :  { %1481 = vperm.xlu0 %3492, %v1463_v53  }
 0x8a8   :  { %2442 = vperm.xlu1 %3493, %v2436_v54  }
 0x8a9   :  { %v2770_v59 = vld [vmem:[%s2897_s18] sm:$0xff]  ;;  %v2771_v60 = vld [vmem:[%s2897_s18 + $0x8] sm:$0xff]  ;;  %v2772_v61 = vld [vmem:[%s2897_s18 + $0x10] sm:$0xff] }
 0x8aa   :  { %2447 = vperm.xlu0 %3492, %v2437_v14   ;;  %v2773_v62 = vld [vmem:[%s2897_s18 + $0x18] sm:$0xff] }
 0x8ac   :  { %2452 = vperm.xlu1 %3493, %v2438_v5  }
 0x8ae   :  { %2457 = vperm.xlu0 %3492, %v2439_v6  }
 0x8b0   :  { %2730 = vperm.xlu1 %3493, %v2724_v56  }
 0x8b2   :  { %2735 = vperm.xlu0 %3492, %v2725_v7  }
 0x8b4   :  { %2740 = vperm.xlu1 %3493, %v2726_v8  }
 0x8b6   :  { %2745 = vperm.xlu0 %3492, %v2727_v58  }
 0x8b8   :  { %2776 = vperm.xlu1 %3493, %v2770_v59  }
 0x8ba   :  { %2781 = vperm.xlu0 %3492, %v2771_v60  }
 0x8bc   :  { %2786 = vperm.xlu1 %3493, %v2772_v61  }
 0x8be   :  { %2791 = vperm.xlu0 %3492, %v2773_v62  }
 0x902   :  { %v2178_v63 = vpop.permute.xlu1 %2177 }
 0x903   :  { %v2189_v12 = vsel %vm134_vm2, 0.0, %v2178_v63 }
 0x904   :  { %v2180_v13 = vpop.permute.xlu0 %2179  ;;  %v2193_v1 = vmul.f32 %v2189_v12, %v3822_v46 }
 0x905   :  { %v2190_v0 = vsel %vm134_vm2, 0.0, %v2180_v13 }
 0x906   :  { %v2194_v2 = vmul.f32 %v2190_v0, %v3822_v46  ;;  %v2182_v3 = vpop.permute.xlu1 %2181  ;;  %v3550_v0 = vld [vmem:[%s3713_s14 + $0x10] sm:$0xff] }
 0x907   :  { %v2191_v4 = vsel %vm134_vm2, 0.0, %v2182_v3 }
 0x908   :  { %v2221_v9 = vpack.c.bf16 %v2194_v2, %v2193_v1  ;;  %v2184_v10 = vpop.permute.xlu0 %2183  ;;  %v2195_v15 = vmul.f32 %v2191_v4, %v3822_v46  ;;  %v3551_v2 = vld [vmem:[%s3713_s14 + $0x18] sm:$0xff]  ;;  %v3538_v4 = vld [vmem:[%s3999_s30] sm:$0xff]  }
 0x909   :  { %v2192_v11 = vsel %vm134_vm2, 0.0, %v2184_v10  ;;  %vm1549_vm2 = vcmask 15360  }
 0x90a   :  { %v2196_v16 = vmul.f32 %v2192_v11, %v3822_v46  ;;  %3345 = vmatprep.subr.bf16.mxu0 %v2221_v9  ;;  %v2198_v46 = vpop.permute.xlu1 %2197  ;;  %v3553_v11 = vld [vmem:[%s3713_s14 + $0x8] sm:$0xff] }
 0x90b   :  { %3346 = vmatpush3.bf16.msra.mxu0 %v2221_v9  ;;  %v2209_v29 = vsel %vm1598_vm15, %v2198_v46, 0.0  ;;  %v3552_v9 = vld [vmem:[%s3713_s14] sm:$0xff]  ;;  %s3584_s14 = smov 28  }
 0x90c   :  { %v2222_v18 = vpack.c.bf16 %v2196_v16, %v2195_v15  ;;  %v2213_v34 = vmul.f32 %v2209_v29, %v3840_v55  ;;  %s2898_s7 = sld [smem:[%s4029_s0 + %s3584_s14]]  }
 0x90e   :  { %3347 = vmatprep.subr.bf16.mxu0 %v2222_v18 }
 0x90f   :  { %3348 = vmatpush3.bf16.msra.mxu0 %v2222_v18 }
 0x912   :  { %3350 = vmatmul.mubr.msk.bf16.vlgmr.msra.gmra.mrb[16].mxu0 %vm482_vm3, %v3533_v24  ;;  %v3539_v24 = vld [vmem:[%s3999_s30 + $0x8] sm:$0xff]  }
 0x913   :  { %3357 = vmatprep.mubr.msk.bf16.mxu0 %vm482_vm3, %v3534_v25  ;;  %v3540_v25 = vld [vmem:[%s4016_s5] sm:$0xff]  }
 0x919   :  { %v1472_v26 = vpop.permute.xlu0 %1471 }
 0x91a   :  { %v1538_v27 = vadd.f32 %v3868_v23, %v1472_v26 }
 0x91b   :  { %v1467_v28 = vpop.permute.xlu1 %1466 }
 0x91c   :  { %1551 = vst.msk [vmem:[%s3967_s22 + $0x8] sm:$0xff] %vm1549_vm2, %v1538_v27  ;;  %v1535_v30 = vadd.f32 %v3864_v21, %v1467_v28 }
 0x91d   :  { %v2200_v31 = vpop.permute.xlu0 %2199 }
 0x91e   :  { %1550 = vst.msk [vmem:[%s3967_s22] sm:$0xff] %vm1549_vm2, %v1535_v30  ;;  %v2484_v32 = vpack.c.bf16 %v1538_v27, %v1535_v30  ;;  %v2210_v33 = vsel %vm1598_vm15, %v2200_v31, 0.0 }
 0x91f   :  { %v2214_v35 = vmul.f32 %v2210_v33, %v3840_v55  ;;  %v2202_v36 = vpop.permute.xlu1 %2201 }
 0x920   :  { %v2211_v23 = vsel %vm1598_vm15, %v2202_v36, 0.0  ;;  %3361 = vmatprep.subr.bf16.mxu1 %v2484_v32 }
 0x921   :  { %v2365_v37 = vpack.c.bf16 %v2214_v35, %v2213_v34  ;;  %3362 = vmatpush3.bf16.msra.mxu1 %v2484_v32  ;;  %v2204_v21 = vpop.permute.xlu0 %2203  ;;  %v2215_v39 = vmul.f32 %v2211_v23, %v3840_v55 }
 0x922   :  { %v2212_v38 = vsel %vm1598_vm15, %v2204_v21, 0.0 }
 0x923   :  { %v2216_v40 = vmul.f32 %v2212_v38, %v3840_v55  ;;  %v1477_v20 = vpop.permute.xlu1 %1476  ;;  %3353 = vmatprep.subr.bf16.mxu0 %v2365_v37  ;;  %v2551_v55 = vld [vmem:[%s2875_s26] sm:$0x3] }
 0x924   :  { %v1543_v41 = vadd.f32 %v3862_v19, %v1477_v20  ;;  %3354 = vmatpush3.bf16.msra.mxu0 %v2365_v37 }
 0x925   :  { %v2366_v42 = vpack.c.bf16 %v2216_v40, %v2215_v39  ;;  %v1482_v43 = vpop.permute.xlu0 %1481 }
 0x926   :  { %1552 = vst.msk [vmem:[%s3967_s22 + $0x10] sm:$0xff] %vm1549_vm2, %v1543_v41  ;;  %v1546_v44 = vadd.f32 %v3866_v22, %v1482_v43 }
 0x927   :  { %3355 = vmatprep.subr.bf16.mxu0 %v2366_v42  ;;  %v2443_v19 = vpop.permute.xlu1 %2442 }
 0x928   :  { %1553 = vst.msk [vmem:[%s3967_s22 + $0x18] sm:$0xff] %vm1549_vm2, %v1546_v44  ;;  %v2485_v47 = vpack.c.bf16 %v1546_v44, %v1543_v41  ;;  %3356 = vmatpush3.bf16.msra.mxu0 %v2366_v42 }
 0x929   :  { %v2448_v22 = vpop.permute.xlu0 %2447 }
 0x92a   :  { %3363 = vmatprep.subr.bf16.mxu1 %v2485_v47 }
 0x92b   :  { %3358 = vmatmul.mubr.msk.bf16.vlgmr.msra.gmra.mrb[16].mxu0 %vm482_vm3, %v3535_v45  ;;  %3364 = vmatpush3.bf16.msra.mxu1 %v2485_v47  ;;  %v2453_v49 = vpop.permute.xlu1 %2452 }
 0x92c   :  { %3369 = vmatprep.subr.msk.mxu1 %vm2564_vm11, %v2551_v55  ;;  %3389 = vmatprep.mubr.msk.bf16.mxu0 %vm482_vm3, %v3540_v25 }
 0x92d   :  { %v2458_v52 = vpop.permute.xlu0 %2457 }
 0x92e   :  { %3366 = vmatmul.mubr.msk.bf16.vlgmr.msra.gmra.mrb[20].mxu1 %vm482_vm3, %v3537_v48 }
 0x92f   :  { %3370 = vmatpush3.msk.msra.mxu1 %vm2564_vm11, %v2551_v55  ;;  %v2731_v29 = vpop.permute.xlu1 %2730 }
 0x931   :  { %v2736_v30 = vpop.permute.xlu0 %2735 }
 0x933   :  { %v2741_v34 = vpop.permute.xlu1 %2740 }
 0x935   :  { %v2746_v38 = vpop.permute.xlu0 %2745 }
 0x9fe   :  { %v3359_v17 = vpop.f32.mrb[16].mxu0 }
 0x9ff   :  { %v2462_v50 = vadd.f32 %v3359_v17, %v2453_v49  ;;  %v2417_v51 = vpop.f32.mrb[17].mxu0  ;;  %v3541_v17 = vld [vmem:[%s4016_s5 + $0x8] sm:$0xff]  }
 0xa00   :  { %v2460_v53 = vadd.f32 %v2443_v19, %v2417_v51  ;;  %v3360_v54 = vpop.f32.mrb[18].mxu0  ;;  %v2782_v51 = vpop.permute.xlu0 %2781 }
 0xa01   :  { %vm2466_vm12 = vcmp.gt.f32.partialorder %v2462_v50, 0.0  ;;  %v2470_v14 = vmul.f32 0.2, %v2462_v50  ;;  %v2463_v5 = vadd.f32 %v3360_v54, %v2458_v52  ;;  %v2420_v6 = vpop.f32.mrb[19].mxu0  ;;  %v3367_v56 = vpop.f32.mrb[20].mxu1 }
 0xa02   :  { %vm2464_vm13 = vcmp.gt.f32.partialorder %v2460_v53, 0.0  ;;  %v2468_v57 = vmul.f32 0.2, %v2460_v53  ;;  %v2461_v7 = vadd.f32 %v2448_v22, %v2420_v6  ;;  %v2536_v8 = vpop.f32.mrb[21].mxu1 }
 0xa03   :  { %v2474_v58 = vsel %vm2466_vm12, %v2462_v50, %v2470_v14  ;;  %vm2467_vm14 = vcmp.gt.f32.partialorder %v2463_v5, 0.0  ;;  %v2471_v59 = vmul.f32 0.2, %v2463_v5  ;;  %v3368_v60 = vpop.f32.mrb[22].mxu1  ;;  %3371 = vmatprep.mubr.msk.f32.mxu1 %vm1549_vm2, %v2536_v8  ;;  %v2777_v50 = vpop.permute.xlu1 %2776 }
 0xa04   :  { %v2472_v61 = vsel %vm2464_vm13, %v2460_v53, %v2468_v57  ;;  %vm2465_vm15 = vcmp.gt.f32.partialorder %v2461_v7, 0.0  ;;  %v2469_v62 = vmul.f32 0.2, %v2461_v7  ;;  %v2539_v63 = vpop.f32.mrb[23].mxu1  ;;  %v2478_v1 = vadd.f32 %v3550_v0, %v2474_v58 }
 0xa05   :  { %v2475_v12 = vsel %vm2467_vm14, %v2463_v5, %v2471_v59  ;;  %3372 = vmatmul.mubr.msk.f32.vlgmr.msra.gmra.mrb[24].mxu1 %vm1549_vm2, %v2539_v63  ;;  %v2476_v10 = vadd.f32 %v3552_v9, %v2472_v61  ;;  %v2792_v5 = vpop.permute.xlu0 %2791 }
 0xa06   :  { %v2473_v13 = vsel %vm2465_vm15, %v2461_v7, %v2469_v62  ;;  %v2479_v3 = vadd.f32 %v3551_v2, %v2475_v12  ;;  %3374 = vmatprep.mubr.msk.f32.mxu1 %vm1549_vm2, %v3367_v56 }
 0xa07   :  { %v2477_v15 = vadd.f32 %v3553_v11, %v2473_v13  ;;  %v2787_v52 = vpop.permute.xlu1 %2786 }
 0xa08   :  { %v2658_v16 = vpack.c.bf16 %v2479_v3, %v2478_v1 }
 0xa09   :  { %v2657_v18 = vpack.c.bf16 %v2477_v15, %v2476_v10  ;;  %3375 = vmatmul.mubr.msk.f32.gmra.mrb[26].mxu1 %vm1549_vm2, %v3368_v60 }
 0xa0a   :  { %3381 = vmatprep.mubr.msk.bf16.mxu1 %vm482_vm3, %v3538_v4 }
 0xa0b   :  { %3377 = vmatprep.subr.bf16.mxu1 %v2657_v18 }
 0xa0c   :  { %3378 = vmatpush3.bf16.msra.mxu1 %v2657_v18 }
 0xa0d   :  { %3379 = vmatprep.subr.bf16.mxu1 %v2658_v16 }
 0xa10   :  { %3380 = vmatpush3.bf16.msra.mxu1 %v2658_v16 }
 0xa13   :  { %3382 = vmatmul.mubr.msk.bf16.vlgmr.msra.gmra.mrb[28].mxu1 %vm482_vm3, %v3539_v24 }
 0xad8   :  { %v3373_v46 = vpop.f32.mrb[24].mxu1 }
 0xad9   :  { %v2634_v26 = vpop.f32.mrb[25].mxu1 }
 0xadc   :  { %v3376_v27 = vpop.f32.mrb[26].mxu1 }
 0xadd   :  { %v2644_v28 = vpop.f32.mrb[27].mxu1 }
 0xae6   :  { %v3383_v31 = vpop.f32.mrb[28].mxu1 }
 0xae7   :  { %v2718_v32 = vadd.f32 %v3383_v31, %v2644_v28  ;;  %v2709_v33 = vpop.f32.mrb[29].mxu1 }
 0xae8   :  { %v2710_v35 = vadd.f32 %v2709_v33, %v2634_v26  ;;  %v3384_v36 = vpop.f32.mrb[30].mxu1 }
 0xae9   :  { %v2750_v23 = vadd.f32 %v2741_v34, %v2718_v32  ;;  %v2721_v37 = vadd.f32 %v3384_v36, %v3376_v27  ;;  %v2712_v21 = vpop.f32.mrb[31].mxu1 }
 0xaea   :  { %v2748_v39 = vadd.f32 %v2731_v29, %v2710_v35  ;;  %v2713_v40 = vadd.f32 %v3373_v46, %v2712_v21 }
 0xaeb   :  { %v2758_v20 = vmul.f32 0.2, %v2750_v23  ;;  %v2751_v41 = vadd.f32 %v2746_v38, %v2721_v37  ;;  %vm2754_vm1 = vcmp.gt.f32.partialorder %v2750_v23, 0.0 }
 0xaec   :  { %v2756_v42 = vmul.f32 0.2, %v2748_v39  ;;  %v2749_v43 = vadd.f32 %v2736_v30, %v2713_v40  ;;  %vm2752_vm4 = vcmp.gt.f32.partialorder %v2748_v39, 0.0 }
 0xaed   :  { %vm2755_vm5 = vcmp.gt.f32.partialorder %v2751_v41, 0.0  ;;  %v2759_v44 = vmul.f32 0.2, %v2751_v41  ;;  %v2762_v47 = vsel %vm2754_vm1, %v2750_v23, %v2758_v20 }
 0xaee   :  { %vm2753_vm6 = vcmp.gt.f32.partialorder %v2749_v43, 0.0  ;;  %v2757_v45 = vmul.f32 0.2, %v2749_v43  ;;  %v2760_v55 = vsel %vm2752_vm4, %v2748_v39, %v2756_v42 }
 0xaef   :  { %v2763_v48 = vsel %vm2755_vm5, %v2751_v41, %v2759_v44 }
 0xaf0   :  { %v2761_v19 = vsel %vm2753_vm6, %v2749_v43, %v2757_v45  ;;  %v2769_v22 = vpack.c.bf16 %v2763_v48, %v2762_v47 }
 0xaf1   :  { %v2768_v49 = vpack.c.bf16 %v2761_v19, %v2760_v55 }
 0xaf3   :  { %3385 = vmatprep.subr.bf16.mxu0 %v2768_v49 }
 0xaf4   :  { %3386 = vmatpush3.bf16.msra.mxu0 %v2768_v49 }
 0xaf5   :  { %3387 = vmatprep.subr.bf16.mxu0 %v2769_v22 }
 0xaf8   :  { %3388 = vmatpush3.bf16.msra.mxu0 %v2769_v22 }
 0xafb   :  { %3390 = vmatmul.mubr.msk.bf16.vlgmr.msra.gmra.mrb[20].mxu0 %vm482_vm3, %v3541_v17 }
 0xbce   :  { %v3391_v53 = vpop.f32.mrb[20].mxu0 }
 0xbcf   :  { %v2853_v54 = vadd.f32 %v3391_v53, %v2787_v52  ;;  %v2844_v14 = vpop.f32.mrb[21].mxu0 }
 0xbd0   :  { %v2845_v6 = vadd.f32 %v2844_v14, %v2777_v50  ;;  %v3392_v56 = vpop.f32.mrb[22].mxu0 }
 0xbd1   :  { %2861 = vst.msk [vmem:[%s2898_s7 + $0x10] sm:$0xff] %vm179_vm0, %v2853_v54  ;;  %v2856_v57 = vadd.f32 %v3392_v56, %v2792_v5  ;;  %v2847_v7 = vpop.f32.mrb[23].mxu0 }
 0xbd2   :  { %2859 = vst.msk [vmem:[%s2898_s7] sm:$0xff] %vm179_vm0, %v2845_v6  ;;  %v2848_v8 = vadd.f32 %v2847_v7, %v2782_v51 }
 0xbd3   :  { %2862 = vst.msk [vmem:[%s2898_s7 + $0x18] sm:$0xff] %vm179_vm0, %v2856_v57 }
 0xbd4   :  { %2860 = vst.msk [vmem:[%s2898_s7 + $0x8] sm:$0xff] %vm179_vm0, %v2848_v8 }

</bundles_post_ra>
